<compile_context>
chip_gen: v7x
topology: tpu7x:2x2x1
jax: 0.10.0
libtpu: 0.0.40
codegen_flags: <defaults>
</compile_context>

<pallas_src>
import math

import jax
import jax.numpy as jnp
from jax import lax
from jax.experimental import pallas as pl
from jax.experimental.pallas import tpu as pltpu


def _rot90_kernel(plus_ref, x_ref, o_ref):
    # plus_ref: SMEM int32[1]; 1 -> +90 (CCW), 0 -> -90 (CW).
    # x_ref / o_ref: VMEM (G, S, S) blocks of square planes.
    G, S, _ = x_ref.shape
    dt = x_ref.dtype
    cdt = dt if jnp.issubdtype(dt, jnp.floating) else jnp.float32

    # Exchange matrix J (anti-diagonal ones): a few VPU vreg ops, hidden under DMA.
    row = lax.broadcasted_iota(jnp.int32, (S, S), 0)
    col = lax.broadcasted_iota(jnp.int32, (S, S), 1)
    J = (row + col == S - 1).astype(cdt)

    @pl.when(plus_ref[0] == 1)
    def _():  # +90 (CCW): out[i, j] = x[j, S-1-i]  ==  J @ x^T
        for g in range(G):
            xt = x_ref[g].astype(cdt).T
            o_ref[g] = jnp.dot(
                J, xt,
                preferred_element_type=jnp.float32,
                precision=lax.Precision.HIGHEST,
            ).astype(o_ref.dtype)

    @pl.when(plus_ref[0] == 0)
    def _():  # -90 (CW):  out[i, j] = x[S-1-j, i]  ==  x^T @ J
        for g in range(G):
            xt = x_ref[g].astype(cdt).T
            o_ref[g] = jnp.dot(
                xt, J,
                preferred_element_type=jnp.float32,
                precision=lax.Precision.HIGHEST,
            ).astype(o_ref.dtype)


def _plane_group(n_planes, plane_bytes, budget_bytes=2 * 1024 * 1024, max_unroll=64):
    """Largest divisor of n_planes whose (G, S, S) block stays under the VMEM budget
    and keeps the in-kernel unrolled loop short."""
    best = 1
    for d in range(1, min(n_planes, max_unroll) + 1):
        if n_planes % d == 0 and d * plane_bytes <= budget_bytes:
            best = d
    return best
    # TODO(synk): spatially tile H for very large single planes (> ~2 MiB per plane).


def _rotate_pallas(plus_code, img):
    S = img.shape[-1]
    N = math.prod(img.shape[:-2])
    x3 = img.reshape(N, S, S)  # flatten leading dims: contiguous, layout-free reshape

    plane_bytes = S * S * jnp.dtype(img.dtype).itemsize
    G = _plane_group(N, plane_bytes)
    # in+out, double-buffered -> ~4 blocks live; leave headroom but stay <= v7x physical.
    vmem_limit = min(64 << 20, max(32 << 20, 6 * G * plane_bytes))

    spec = pl.BlockSpec((G, S, S), lambda n, plus: (n, 0, 0))
    out = pl.pallas_call(
        _rot90_kernel,
        out_shape=jax.ShapeDtypeStruct((N, S, S), img.dtype),
        grid_spec=pltpu.PrefetchScalarGridSpec(
            num_scalar_prefetch=1,
            grid=(N // G,),
            in_specs=[spec],
            out_specs=spec,
        ),
        compiler_params=pltpu.CompilerParams(
            dimension_semantics=("parallel",),
            vmem_limit_bytes=vmem_limit,
        ),
    )(plus_code, x3)
    return out.reshape(img.shape)


def random_rotate90(img, key, p=0.5):
    """JAX/Pallas equivalent of RandomRotate90.forward for square [..., H, W] tensors."""
    H, W = img.shape[-2], img.shape[-1]
    assert H == W, "90-degree rotation with expand=False assumes square spatial dims"

    k1, k2 = jax.random.split(key)
    do_rotate = jax.random.uniform(k1) < p                       # torch.rand(1) < self.p
    plus = (jax.random.uniform(k2) < 0.5).astype(jnp.int32)      # torch.rand(1) < 0.5 -> +90
    plus = plus.reshape(1)

    # Identity branch never touches the Pallas kernel -> no HBM round trip.
    return lax.cond(
        do_rotate,
        lambda ops: _rotate_pallas(ops[0], ops[1]),
        lambda ops: ops[1],
        (plus, img),
    )


def _reference(img, key, p=0.5):
    # Pure-JAX reference mirroring the PyTorch semantics (rot90 == exact 90° rotation
    # for square images).
    k1, k2 = jax.random.split(key)
    do_rotate = jax.random.uniform(k1) < p
    plus = jax.random.uniform(k2) < 0.5
    plus90 = jnp.rot90(img, k=1, axes=(-2, -1))
    minus90 = jnp.rot90(img, k=-1, axes=(-2, -1))
    rotated = jnp.where(plus, plus90, minus90)
    return jnp.where(do_rotate, rotated, img)


if __name__ == "__main__":
    key = jax.random.PRNGKey(0)
    k_img, k_rot = jax.random.split(key)
    x = jax.random.normal(k_img, (2, 4, 16, 16), dtype=jnp.float32)

    # Direct kernel checks: both rotation directions against jnp.rot90.
    plus_code = jnp.array([1], dtype=jnp.int32)
    minus_code = jnp.array([0], dtype=jnp.int32)
    out_p = jax.block_until_ready(_rotate_pallas(plus_code, x))
    out_m = jax.block_until_ready(_rotate_pallas(minus_code, x))
    assert jnp.allclose(out_p, jnp.rot90(x, k=1, axes=(-2, -1)), atol=1e-6), "+90 mismatch"
    assert jnp.allclose(out_m, jnp.rot90(x, k=-1, axes=(-2, -1)), atol=1e-6), "-90 mismatch"

    # Stochastic path (p=0.5): may take either branch, must match the reference.
    out = jax.block_until_ready(random_rotate90(x, k_rot, p=0.5))
    ref = _reference(x, k_rot, p=0.5)
    assert out.shape == x.shape and out.dtype == x.dtype
    assert jnp.allclose(out, ref, atol=1e-6), "mismatch vs JAX reference (p=0.5)"

    # Forced-rotate path (p=2.0): guarantees the Pallas kernel executes in the module path.
    out_rot = jax.block_until_ready(random_rotate90(x, k_rot, p=2.0))
    ref_rot = _reference(x, k_rot, p=2.0)
    assert jnp.allclose(out_rot, ref_rot, atol=1e-6), "mismatch vs JAX reference (forced)"

    print("KERNEL_OK")
</pallas_src>

<mosaic_0001>
module attributes {stable_mosaic.version = 11 : i64} {
  func.func @_rot90_kernel(%arg0: i32, %arg1: memref<1xi32, #tpu.memory_space<smem>>, %arg2: memref<8x16x16xf32, #tpu.memory_space<vmem>>, %arg3: memref<8x16x16xf32, #tpu.memory_space<vmem>>) attributes {dimension_semantics = [#tpu.dimension_semantics<parallel>], iteration_bounds = array<i64: 1>, scalar_prefetch = 1 : i64, scratch_operands = 0 : i64, tpu.core_type = #tpu.core_type<tc>, window_params = [{transform_indices = @transform_0, window_bounds = array<i64: 8, 16, 16>}, {transform_indices = @transform_1, window_bounds = array<i64: 8, 16, 16>}]} {
    %0 = tpu.iota {dimensions = array<i32: 0>} : vector<16x16xi32>
    %1 = tpu.iota {dimensions = array<i32: 1>} : vector<16x16xi32>
    %2 = arith.addi %0, %1 : vector<16x16xi32>
    %c15_i32 = arith.constant 15 : i32
    %3 = vector.broadcast %c15_i32 : i32 to vector<16x16xi32>
    %4 = arith.cmpi eq, %2, %3 : vector<16x16xi32>
    %5 = arith.extui %4 : vector<16x16xi1> to vector<16x16xi32>
    %6 = arith.sitofp %5 : vector<16x16xi32> to vector<16x16xf32>
    %c0 = arith.constant 0 : index
    %7 = memref.load %arg1[%c0] : memref<1xi32, #tpu.memory_space<smem>>
    %c1_i32 = arith.constant 1 : i32
    %8 = arith.cmpi eq, %7, %c1_i32 : i32
    %9 = arith.extui %8 : i1 to i32
    %c0_i32 = arith.constant 0 : i32
    %10 = arith.cmpi ne, %9, %c0_i32 : i32
    scf.if %10 {
      %c0_3 = arith.constant 0 : index
      %c0_4 = arith.constant 0 : index
      %c0_5 = arith.constant 0 : index
      %15 = vector.load %arg2[%c0_3, %c0_4, %c0_5] : memref<8x16x16xf32, #tpu.memory_space<vmem>>, vector<1x16x16xf32>
      %16 = vector.shape_cast %15 : vector<1x16x16xf32> to vector<16x16xf32>
      %17 = tpu.transpose %16, [1, 0] : vector<16x16xf32> -> vector<16x16xf32>
      %cst = arith.constant dense<0.000000e+00> : vector<16x16xf32>
      %18 = tpu.matmul %6, %17, %cst {dimension_numbers = #tpu.dot_dimension_numbers<[1], [0], [0], [1], [0, 0, 1, 1], [], []>, precision = #tpu.contract_precision<fp32>} : vector<16x16xf32>, vector<16x16xf32>, vector<16x16xf32> -> vector<16x16xf32>
      %c0_6 = arith.constant 0 : index
      %c0_7 = arith.constant 0 : index
      %c0_8 = arith.constant 0 : index
      %19 = vector.load %arg3[%c0_6, %c0_7, %c0_8] : memref<8x16x16xf32, #tpu.memory_space<vmem>>, vector<1x16x16xf32>
      %20 = vector.shape_cast %19 : vector<1x16x16xf32> to vector<16x16xf32>
      %21 = vector.shape_cast %18 : vector<16x16xf32> to vector<1x16x16xf32>
      tpu.vector_store %arg3[%c0_6, %c0_7, %c0_8], %21 {strides = array<i32>} : memref<8x16x16xf32, #tpu.memory_space<vmem>>, vector<1x16x16xf32>,
      %c1 = arith.constant 1 : index
      %c0_9 = arith.constant 0 : index
      %c0_10 = arith.constant 0 : index
      %22 = vector.load %arg2[%c1, %c0_9, %c0_10] : memref<8x16x16xf32, #tpu.memory_space<vmem>>, vector<1x16x16xf32>
      %23 = vector.shape_cast %22 : vector<1x16x16xf32> to vector<16x16xf32>
      %24 = tpu.transpose %23, [1, 0] : vector<16x16xf32> -> vector<16x16xf32>
      %cst_11 = arith.constant dense<0.000000e+00> : vector<16x16xf32>
      %25 = tpu.matmul %6, %24, %cst_11 {dimension_numbers = #tpu.dot_dimension_numbers<[1], [0], [0], [1], [0, 0, 1, 1], [], []>, precision = #tpu.contract_precision<fp32>} : vector<16x16xf32>, vector<16x16xf32>, vector<16x16xf32> -> vector<16x16xf32>
      %c1_12 = arith.constant 1 : index
      %c0_13 = arith.constant 0 : index
      %c0_14 = arith.constant 0 : index
      %26 = vector.load %arg3[%c1_12, %c0_13, %c0_14] : memref<8x16x16xf32, #tpu.memory_space<vmem>>, vector<1x16x16xf32>
      %27 = vector.shape_cast %26 : vector<1x16x16xf32> to vector<16x16xf32>
      %28 = vector.shape_cast %25 : vector<16x16xf32> to vector<1x16x16xf32>
      tpu.vector_store %arg3[%c1_12, %c0_13, %c0_14], %28 {strides = array<i32>} : memref<8x16x16xf32, #tpu.memory_space<vmem>>, vector<1x16x16xf32>,
      %c2 = arith.constant 2 : index
      %c0_15 = arith.constant 0 : index
      %c0_16 = arith.constant 0 : index
      %29 = vector.load %arg2[%c2, %c0_15, %c0_16] : memref<8x16x16xf32, #tpu.memory_space<vmem>>, vector<1x16x16xf32>
      %30 = vector.shape_cast %29 : vector<1x16x16xf32> to vector<16x16xf32>
      %31 = tpu.transpose %30, [1, 0] : vector<16x16xf32> -> vector<16x16xf32>
      %cst_17 = arith.constant dense<0.000000e+00> : vector<16x16xf32>
      %32 = tpu.matmul %6, %31, %cst_17 {dimension_numbers = #tpu.dot_dimension_numbers<[1], [0], [0], [1], [0, 0, 1, 1], [], []>, precision = #tpu.contract_precision<fp32>} : vector<16x16xf32>, vector<16x16xf32>, vector<16x16xf32> -> vector<16x16xf32>
      %c2_18 = arith.constant 2 : index
      %c0_19 = arith.constant 0 : index
      %c0_20 = arith.constant 0 : index
      %33 = vector.load %arg3[%c2_18, %c0_19, %c0_20] : memref<8x16x16xf32, #tpu.memory_space<vmem>>, vector<1x16x16xf32>
      %34 = vector.shape_cast %33 : vector<1x16x16xf32> to vector<16x16xf32>
      %35 = vector.shape_cast %32 : vector<16x16xf32> to vector<1x16x16xf32>
      tpu.vector_store %arg3[%c2_18, %c0_19, %c0_20], %35 {strides = array<i32>} : memref<8x16x16xf32, #tpu.memory_space<vmem>>, vector<1x16x16xf32>,
      %c3 = arith.constant 3 : index
      %c0_21 = arith.constant 0 : index
      %c0_22 = arith.constant 0 : index
      %36 = vector.load %arg2[%c3, %c0_21, %c0_22] : memref<8x16x16xf32, #tpu.memory_space<vmem>>, vector<1x16x16xf32>
      %37 = vector.shape_cast %36 : vector<1x16x16xf32> to vector<16x16xf32>
      %38 = tpu.transpose %37, [1, 0] : vector<16x16xf32> -> vector<16x16xf32>
      %cst_23 = arith.constant dense<0.000000e+00> : vector<16x16xf32>
      %39 = tpu.matmul %6, %38, %cst_23 {dimension_numbers = #tpu.dot_dimension_numbers<[1], [0], [0], [1], [0, 0, 1, 1], [], []>, precision = #tpu.contract_precision<fp32>} : vector<16x16xf32>, vector<16x16xf32>, vector<16x16xf32> -> vector<16x16xf32>
      %c3_24 = arith.constant 3 : index
      %c0_25 = arith.constant 0 : index
      %c0_26 = arith.constant 0 : index
      %40 = vector.load %arg3[%c3_24, %c0_25, %c0_26] : memref<8x16x16xf32, #tpu.memory_space<vmem>>, vector<1x16x16xf32>
      %41 = vector.shape_cast %40 : vector<1x16x16xf32> to vector<16x16xf32>
      %42 = vector.shape_cast %39 : vector<16x16xf32> to vector<1x16x16xf32>
      tpu.vector_store %arg3[%c3_24, %c0_25, %c0_26], %42 {strides = array<i32>} : memref<8x16x16xf32, #tpu.memory_space<vmem>>, vector<1x16x16xf32>,
      %c4 = arith.constant 4 : index
      %c0_27 = arith.constant 0 : index
      %c0_28 = arith.constant 0 : index
      %43 = vector.load %arg2[%c4, %c0_27, %c0_28] : memref<8x16x16xf32, #tpu.memory_space<vmem>>, vector<1x16x16xf32>
      %44 = vector.shape_cast %43 : vector<1x16x16xf32> to vector<16x16xf32>
      %45 = tpu.transpose %44, [1, 0] : vector<16x16xf32> -> vector<16x16xf32>
      %cst_29 = arith.constant dense<0.000000e+00> : vector<16x16xf32>
      %46 = tpu.matmul %6, %45, %cst_29 {dimension_numbers = #tpu.dot_dimension_numbers<[1], [0], [0], [1], [0, 0, 1, 1], [], []>, precision = #tpu.contract_precision<fp32>} : vector<16x16xf32>, vector<16x16xf32>, vector<16x16xf32> -> vector<16x16xf32>
      %c4_30 = arith.constant 4 : index
      %c0_31 = arith.constant 0 : index
      %c0_32 = arith.constant 0 : index
      %47 = vector.load %arg3[%c4_30, %c0_31, %c0_32] : memref<8x16x16xf32, #tpu.memory_space<vmem>>, vector<1x16x16xf32>
      %48 = vector.shape_cast %47 : vector<1x16x16xf32> to vector<16x16xf32>
      %49 = vector.shape_cast %46 : vector<16x16xf32> to vector<1x16x16xf32>
      tpu.vector_store %arg3[%c4_30, %c0_31, %c0_32], %49 {strides = array<i32>} : memref<8x16x16xf32, #tpu.memory_space<vmem>>, vector<1x16x16xf32>,
      %c5 = arith.constant 5 : index
      %c0_33 = arith.constant 0 : index
      %c0_34 = arith.constant 0 : index
      %50 = vector.load %arg2[%c5, %c0_33, %c0_34] : memref<8x16x16xf32, #tpu.memory_space<vmem>>, vector<1x16x16xf32>
      %51 = vector.shape_cast %50 : vector<1x16x16xf32> to vector<16x16xf32>
      %52 = tpu.transpose %51, [1, 0] : vector<16x16xf32> -> vector<16x16xf32>
      %cst_35 = arith.constant dense<0.000000e+00> : vector<16x16xf32>
      %53 = tpu.matmul %6, %52, %cst_35 {dimension_numbers = #tpu.dot_dimension_numbers<[1], [0], [0], [1], [0, 0, 1, 1], [], []>, precision = #tpu.contract_precision<fp32>} : vector<16x16xf32>, vector<16x16xf32>, vector<16x16xf32> -> vector<16x16xf32>
      %c5_36 = arith.constant 5 : index
      %c0_37 = arith.constant 0 : index
      %c0_38 = arith.constant 0 : index
      %54 = vector.load %arg3[%c5_36, %c0_37, %c0_38] : memref<8x16x16xf32, #tpu.memory_space<vmem>>, vector<1x16x16xf32>
      %55 = vector.shape_cast %54 : vector<1x16x16xf32> to vector<16x16xf32>
      %56 = vector.shape_cast %53 : vector<16x16xf32> to vector<1x16x16xf32>
      tpu.vector_store %arg3[%c5_36, %c0_37, %c0_38], %56 {strides = array<i32>} : memref<8x16x16xf32, #tpu.memory_space<vmem>>, vector<1x16x16xf32>,
      %c6 = arith.constant 6 : index
      %c0_39 = arith.constant 0 : index
      %c0_40 = arith.constant 0 : index
      %57 = vector.load %arg2[%c6, %c0_39, %c0_40] : memref<8x16x16xf32, #tpu.memory_space<vmem>>, vector<1x16x16xf32>
      %58 = vector.shape_cast %57 : vector<1x16x16xf32> to vector<16x16xf32>
      %59 = tpu.transpose %58, [1, 0] : vector<16x16xf32> -> vector<16x16xf32>
      %cst_41 = arith.constant dense<0.000000e+00> : vector<16x16xf32>
      %60 = tpu.matmul %6, %59, %cst_41 {dimension_numbers = #tpu.dot_dimension_numbers<[1], [0], [0], [1], [0, 0, 1, 1], [], []>, precision = #tpu.contract_precision<fp32>} : vector<16x16xf32>, vector<16x16xf32>, vector<16x16xf32> -> vector<16x16xf32>
      %c6_42 = arith.constant 6 : index
      %c0_43 = arith.constant 0 : index
      %c0_44 = arith.constant 0 : index
      %61 = vector.load %arg3[%c6_42, %c0_43, %c0_44] : memref<8x16x16xf32, #tpu.memory_space<vmem>>, vector<1x16x16xf32>
      %62 = vector.shape_cast %61 : vector<1x16x16xf32> to vector<16x16xf32>
      %63 = vector.shape_cast %60 : vector<16x16xf32> to vector<1x16x16xf32>
      tpu.vector_store %arg3[%c6_42, %c0_43, %c0_44], %63 {strides = array<i32>} : memref<8x16x16xf32, #tpu.memory_space<vmem>>, vector<1x16x16xf32>,
      %c7 = arith.constant 7 : index
      %c0_45 = arith.constant 0 : index
      %c0_46 = arith.constant 0 : index
      %64 = vector.load %arg2[%c7, %c0_45, %c0_46] : memref<8x16x16xf32, #tpu.memory_space<vmem>>, vector<1x16x16xf32>
      %65 = vector.shape_cast %64 : vector<1x16x16xf32> to vector<16x16xf32>
      %66 = tpu.transpose %65, [1, 0] : vector<16x16xf32> -> vector<16x16xf32>
      %cst_47 = arith.constant dense<0.000000e+00> : vector<16x16xf32>
      %67 = tpu.matmul %6, %66, %cst_47 {dimension_numbers = #tpu.dot_dimension_numbers<[1], [0], [0], [1], [0, 0, 1, 1], [], []>, precision = #tpu.contract_precision<fp32>} : vector<16x16xf32>, vector<16x16xf32>, vector<16x16xf32> -> vector<16x16xf32>
      %c7_48 = arith.constant 7 : index
      %c0_49 = arith.constant 0 : index
      %c0_50 = arith.constant 0 : index
      %68 = vector.load %arg3[%c7_48, %c0_49, %c0_50] : memref<8x16x16xf32, #tpu.memory_space<vmem>>, vector<1x16x16xf32>
      %69 = vector.shape_cast %68 : vector<1x16x16xf32> to vector<16x16xf32>
      %70 = vector.shape_cast %67 : vector<16x16xf32> to vector<1x16x16xf32>
      tpu.vector_store %arg3[%c7_48, %c0_49, %c0_50], %70 {strides = array<i32>} : memref<8x16x16xf32, #tpu.memory_space<vmem>>, vector<1x16x16xf32>,
    } else {
    }
    %c0_0 = arith.constant 0 : index
    %11 = memref.load %arg1[%c0_0] : memref<1xi32, #tpu.memory_space<smem>>
    %c0_i32_1 = arith.constant 0 : i32
    %12 = arith.cmpi eq, %11, %c0_i32_1 : i32
    %13 = arith.extui %12 : i1 to i32
    %c0_i32_2 = arith.constant 0 : i32
    %14 = arith.cmpi ne, %13, %c0_i32_2 : i32
    scf.if %14 {
      %c0_3 = arith.constant 0 : index
      %c0_4 = arith.constant 0 : index
      %c0_5 = arith.constant 0 : index
      %15 = vector.load %arg2[%c0_3, %c0_4, %c0_5] : memref<8x16x16xf32, #tpu.memory_space<vmem>>, vector<1x16x16xf32>
      %16 = vector.shape_cast %15 : vector<1x16x16xf32> to vector<16x16xf32>
      %17 = tpu.transpose %16, [1, 0] : vector<16x16xf32> -> vector<16x16xf32>
      %cst = arith.constant dense<0.000000e+00> : vector<16x16xf32>
      %18 = tpu.matmul %17, %6, %cst {dimension_numbers = #tpu.dot_dimension_numbers<[1], [0], [0], [1], [0, 0, 1, 1], [], []>, precision = #tpu.contract_precision<fp32>} : vector<16x16xf32>, vector<16x16xf32>, vector<16x16xf32> -> vector<16x16xf32>
      %c0_6 = arith.constant 0 : index
      %c0_7 = arith.constant 0 : index
      %c0_8 = arith.constant 0 : index
      %19 = vector.load %arg3[%c0_6, %c0_7, %c0_8] : memref<8x16x16xf32, #tpu.memory_space<vmem>>, vector<1x16x16xf32>
      %20 = vector.shape_cast %19 : vector<1x16x16xf32> to vector<16x16xf32>
      %21 = vector.shape_cast %18 : vector<16x16xf32> to vector<1x16x16xf32>
      tpu.vector_store %arg3[%c0_6, %c0_7, %c0_8], %21 {strides = array<i32>} : memref<8x16x16xf32, #tpu.memory_space<vmem>>, vector<1x16x16xf32>,
      %c1 = arith.constant 1 : index
      %c0_9 = arith.constant 0 : index
      %c0_10 = arith.constant 0 : index
      %22 = vector.load %arg2[%c1, %c0_9, %c0_10] : memref<8x16x16xf32, #tpu.memory_space<vmem>>, vector<1x16x16xf32>
      %23 = vector.shape_cast %22 : vector<1x16x16xf32> to vector<16x16xf32>
      %24 = tpu.transpose %23, [1, 0] : vector<16x16xf32> -> vector<16x16xf32>
      %cst_11 = arith.constant dense<0.000000e+00> : vector<16x16xf32>
      %25 = tpu.matmul %24, %6, %cst_11 {dimension_numbers = #tpu.dot_dimension_numbers<[1], [0], [0], [1], [0, 0, 1, 1], [], []>, precision = #tpu.contract_precision<fp32>} : vector<16x16xf32>, vector<16x16xf32>, vector<16x16xf32> -> vector<16x16xf32>
      %c1_12 = arith.constant 1 : index
      %c0_13 = arith.constant 0 : index
      %c0_14 = arith.constant 0 : index
      %26 = vector.load %arg3[%c1_12, %c0_13, %c0_14] : memref<8x16x16xf32, #tpu.memory_space<vmem>>, vector<1x16x16xf32>
      %27 = vector.shape_cast %26 : vector<1x16x16xf32> to vector<16x16xf32>
      %28 = vector.shape_cast %25 : vector<16x16xf32> to vector<1x16x16xf32>
      tpu.vector_store %arg3[%c1_12, %c0_13, %c0_14], %28 {strides = array<i32>} : memref<8x16x16xf32, #tpu.memory_space<vmem>>, vector<1x16x16xf32>,
      %c2 = arith.constant 2 : index
      %c0_15 = arith.constant 0 : index
      %c0_16 = arith.constant 0 : index
      %29 = vector.load %arg2[%c2, %c0_15, %c0_16] : memref<8x16x16xf32, #tpu.memory_space<vmem>>, vector<1x16x16xf32>
      %30 = vector.shape_cast %29 : vector<1x16x16xf32> to vector<16x16xf32>
      %31 = tpu.transpose %30, [1, 0] : vector<16x16xf32> -> vector<16x16xf32>
      %cst_17 = arith.constant dense<0.000000e+00> : vector<16x16xf32>
      %32 = tpu.matmul %31, %6, %cst_17 {dimension_numbers = #tpu.dot_dimension_numbers<[1], [0], [0], [1], [0, 0, 1, 1], [], []>, precision = #tpu.contract_precision<fp32>} : vector<16x16xf32>, vector<16x16xf32>, vector<16x16xf32> -> vector<16x16xf32>
      %c2_18 = arith.constant 2 : index
      %c0_19 = arith.constant 0 : index
      %c0_20 = arith.constant 0 : index
      %33 = vector.load %arg3[%c2_18, %c0_19, %c0_20] : memref<8x16x16xf32, #tpu.memory_space<vmem>>, vector<1x16x16xf32>
      %34 = vector.shape_cast %33 : vector<1x16x16xf32> to vector<16x16xf32>
      %35 = vector.shape_cast %32 : vector<16x16xf32> to vector<1x16x16xf32>
      tpu.vector_store %arg3[%c2_18, %c0_19, %c0_20], %35 {strides = array<i32>} : memref<8x16x16xf32, #tpu.memory_space<vmem>>, vector<1x16x16xf32>,
      %c3 = arith.constant 3 : index
      %c0_21 = arith.constant 0 : index
      %c0_22 = arith.constant 0 : index
      %36 = vector.load %arg2[%c3, %c0_21, %c0_22] : memref<8x16x16xf32, #tpu.memory_space<vmem>>, vector<1x16x16xf32>
      %37 = vector.shape_cast %36 : vector<1x16x16xf32> to vector<16x16xf32>
      %38 = tpu.transpose %37, [1, 0] : vector<16x16xf32> -> vector<16x16xf32>
      %cst_23 = arith.constant dense<0.000000e+00> : vector<16x16xf32>
      %39 = tpu.matmul %38, %6, %cst_23 {dimension_numbers = #tpu.dot_dimension_numbers<[1], [0], [0], [1], [0, 0, 1, 1], [], []>, precision = #tpu.contract_precision<fp32>} : vector<16x16xf32>, vector<16x16xf32>, vector<16x16xf32> -> vector<16x16xf32>
      %c3_24 = arith.constant 3 : index
      %c0_25 = arith.constant 0 : index
      %c0_26 = arith.constant 0 : index
      %40 = vector.load %arg3[%c3_24, %c0_25, %c0_26] : memref<8x16x16xf32, #tpu.memory_space<vmem>>, vector<1x16x16xf32>
      %41 = vector.shape_cast %40 : vector<1x16x16xf32> to vector<16x16xf32>
      %42 = vector.shape_cast %39 : vector<16x16xf32> to vector<1x16x16xf32>
      tpu.vector_store %arg3[%c3_24, %c0_25, %c0_26], %42 {strides = array<i32>} : memref<8x16x16xf32, #tpu.memory_space<vmem>>, vector<1x16x16xf32>,
      %c4 = arith.constant 4 : index
      %c0_27 = arith.constant 0 : index
      %c0_28 = arith.constant 0 : index
      %43 = vector.load %arg2[%c4, %c0_27, %c0_28] : memref<8x16x16xf32, #tpu.memory_space<vmem>>, vector<1x16x16xf32>
      %44 = vector.shape_cast %43 : vector<1x16x16xf32> to vector<16x16xf32>
      %45 = tpu.transpose %44, [1, 0] : vector<16x16xf32> -> vector<16x16xf32>
      %cst_29 = arith.constant dense<0.000000e+00> : vector<16x16xf32>
      %46 = tpu.matmul %45, %6, %cst_29 {dimension_numbers = #tpu.dot_dimension_numbers<[1], [0], [0], [1], [0, 0, 1, 1], [], []>, precision = #tpu.contract_precision<fp32>} : vector<16x16xf32>, vector<16x16xf32>, vector<16x16xf32> -> vector<16x16xf32>
      %c4_30 = arith.constant 4 : index
      %c0_31 = arith.constant 0 : index
      %c0_32 = arith.constant 0 : index
      %47 = vector.load %arg3[%c4_30, %c0_31, %c0_32] : memref<8x16x16xf32, #tpu.memory_space<vmem>>, vector<1x16x16xf32>
      %48 = vector.shape_cast %47 : vector<1x16x16xf32> to vector<16x16xf32>
      %49 = vector.shape_cast %46 : vector<16x16xf32> to vector<1x16x16xf32>
      tpu.vector_store %arg3[%c4_30, %c0_31, %c0_32], %49 {strides = array<i32>} : memref<8x16x16xf32, #tpu.memory_space<vmem>>, vector<1x16x16xf32>,
      %c5 = arith.constant 5 : index
      %c0_33 = arith.constant 0 : index
      %c0_34 = arith.constant 0 : index
      %50 = vector.load %arg2[%c5, %c0_33, %c0_34] : memref<8x16x16xf32, #tpu.memory_space<vmem>>, vector<1x16x16xf32>
      %51 = vector.shape_cast %50 : vector<1x16x16xf32> to vector<16x16xf32>
      %52 = tpu.transpose %51, [1, 0] : vector<16x16xf32> -> vector<16x16xf32>
      %cst_35 = arith.constant dense<0.000000e+00> : vector<16x16xf32>
      %53 = tpu.matmul %52, %6, %cst_35 {dimension_numbers = #tpu.dot_dimension_numbers<[1], [0], [0], [1], [0, 0, 1, 1], [], []>, precision = #tpu.contract_precision<fp32>} : vector<16x16xf32>, vector<16x16xf32>, vector<16x16xf32> -> vector<16x16xf32>
      %c5_36 = arith.constant 5 : index
      %c0_37 = arith.constant 0 : index
      %c0_38 = arith.constant 0 : index
      %54 = vector.load %arg3[%c5_36, %c0_37, %c0_38] : memref<8x16x16xf32, #tpu.memory_space<vmem>>, vector<1x16x16xf32>
      %55 = vector.shape_cast %54 : vector<1x16x16xf32> to vector<16x16xf32>
      %56 = vector.shape_cast %53 : vector<16x16xf32> to vector<1x16x16xf32>
      tpu.vector_store %arg3[%c5_36, %c0_37, %c0_38], %56 {strides = array<i32>} : memref<8x16x16xf32, #tpu.memory_space<vmem>>, vector<1x16x16xf32>,
      %c6 = arith.constant 6 : index
      %c0_39 = arith.constant 0 : index
      %c0_40 = arith.constant 0 : index
      %57 = vector.load %arg2[%c6, %c0_39, %c0_40] : memref<8x16x16xf32, #tpu.memory_space<vmem>>, vector<1x16x16xf32>
      %58 = vector.shape_cast %57 : vector<1x16x16xf32> to vector<16x16xf32>
      %59 = tpu.transpose %58, [1, 0] : vector<16x16xf32> -> vector<16x16xf32>
      %cst_41 = arith.constant dense<0.000000e+00> : vector<16x16xf32>
      %60 = tpu.matmul %59, %6, %cst_41 {dimension_numbers = #tpu.dot_dimension_numbers<[1], [0], [0], [1], [0, 0, 1, 1], [], []>, precision = #tpu.contract_precision<fp32>} : vector<16x16xf32>, vector<16x16xf32>, vector<16x16xf32> -> vector<16x16xf32>
      %c6_42 = arith.constant 6 : index
      %c0_43 = arith.constant 0 : index
      %c0_44 = arith.constant 0 : index
      %61 = vector.load %arg3[%c6_42, %c0_43, %c0_44] : memref<8x16x16xf32, #tpu.memory_space<vmem>>, vector<1x16x16xf32>
      %62 = vector.shape_cast %61 : vector<1x16x16xf32> to vector<16x16xf32>
      %63 = vector.shape_cast %60 : vector<16x16xf32> to vector<1x16x16xf32>
      tpu.vector_store %arg3[%c6_42, %c0_43, %c0_44], %63 {strides = array<i32>} : memref<8x16x16xf32, #tpu.memory_space<vmem>>, vector<1x16x16xf32>,
      %c7 = arith.constant 7 : index
      %c0_45 = arith.constant 0 : index
      %c0_46 = arith.constant 0 : index
      %64 = vector.load %arg2[%c7, %c0_45, %c0_46] : memref<8x16x16xf32, #tpu.memory_space<vmem>>, vector<1x16x16xf32>
      %65 = vector.shape_cast %64 : vector<1x16x16xf32> to vector<16x16xf32>
      %66 = tpu.transpose %65, [1, 0] : vector<16x16xf32> -> vector<16x16xf32>
      %cst_47 = arith.constant dense<0.000000e+00> : vector<16x16xf32>
      %67 = tpu.matmul %66, %6, %cst_47 {dimension_numbers = #tpu.dot_dimension_numbers<[1], [0], [0], [1], [0, 0, 1, 1], [], []>, precision = #tpu.contract_precision<fp32>} : vector<16x16xf32>, vector<16x16xf32>, vector<16x16xf32> -> vector<16x16xf32>
      %c7_48 = arith.constant 7 : index
      %c0_49 = arith.constant 0 : index
      %c0_50 = arith.constant 0 : index
      %68 = vector.load %arg3[%c7_48, %c0_49, %c0_50] : memref<8x16x16xf32, #tpu.memory_space<vmem>>, vector<1x16x16xf32>
      %69 = vector.shape_cast %68 : vector<1x16x16xf32> to vector<16x16xf32>
      %70 = vector.shape_cast %67 : vector<16x16xf32> to vector<1x16x16xf32>
      tpu.vector_store %arg3[%c7_48, %c0_49, %c0_50], %70 {strides = array<i32>} : memref<8x16x16xf32, #tpu.memory_space<vmem>>, vector<1x16x16xf32>,
    } else {
    }
    return
  }
  func.func @transform_0(%arg0: i32, %arg1: memref<1xi32, #tpu.memory_space<smem>>) -> (i32, i32, i32) {
    %c0_i32 = arith.constant 0 : i32
    %c0_i32_0 = arith.constant 0 : i32
    %c0_i32_1 = arith.constant 0 : i32
    return %arg0, %c0_i32, %c0_i32_0 : i32, i32, i32
  }
  func.func @transform_1(%arg0: i32, %arg1: memref<1xi32, #tpu.memory_space<smem>>) -> (i32, i32, i32) {
    %c0_i32 = arith.constant 0 : i32
    %c0_i32_0 = arith.constant 0 : i32
    %c0_i32_1 = arith.constant 0 : i32
    return %arg0, %c0_i32, %c0_i32_0 : i32, i32, i32
  }
}

</mosaic_0001>

<bundles_post_ra>
// kernel: tpu_custom_call.1
= control target key start
LH: loop header
LB: loop body
LE: loop exit
PB: predicated region body
PF: predicated region fallthrough
CT: control target
= control target key end

     0   :  { %s11027_s0 = inlined_call_operand.<no memory space> [shape: s32[1], index: 0, kind: input, shape index: {}]   ;;  %s11028_s1 = inlined_call_operand.hbm [shape: f32[8,16,16], index: 1, kind: input, shape index: {}]   ;;  %s11029_s2 = inlined_call_operand.hbm [shape: f32[8,16,16], index: 2, kind: output, shape index: {}]  }
   0x1   :  { %7 = sst [smem:[#allocation3]] %s11027_s0 }
   0x2   :  { %8 = vsyncpa [#allocation5], 0 }
   0x3   :  { %9 = vsyncpa [#allocation6], 0  ;;  %s10304_s11 = smov [#allocation4]   ;;  %s10256_s15 = scalar_lea.hbm %s11028_s1, 2048 }
   0x4   :  { %s15_s12 = sshll.u32 %s10304_s11, 4  ;;  %p10257_p0 = scmp.ne.s32.totalorder %s11028_s1, %s10256_s15  ;;  %s16_s12 = int_to_ptr.vmem [resolvable:$true] %s15_s12 }
   0x5   :  { %p10260_p1 = scmp.lt.u32.totalorder %s10256_s15, %s11028_s1 }
   0x7   :  { %p10262_p2 = pnand %p10260_p1, %p10257_p0 }
   0x9   :  { %10265 = shalt.err (!%p10262_p2)
}
   0xa   :  { %s10266_s0 = scalar_lea.vmem %s16_s12, 2048  ;;  %p10271_p4 = scmp.lt.s32.totalorder %s16_s12, %s16_s12 }
   0xb   :  { %p10267_p3 = scmp.ne.s32.totalorder %s16_s12, %s10266_s0  ;;  %p10272_p5 = scmp.lt.s32.totalorder %s10266_s0, %s10266_s0 }
   0xd   :  { %p10273_p6 = por %p10272_p5, %p10271_p4 }
   0xf   :  { %p10274_p7 = pnand %p10273_p6, %p10267_p3 }
  0x11   :  { %10277 = shalt.err (!%p10274_p7)
}
  0x12   :  { %s10305_s20 = smov 128   ;;  %s10306_s21 = smov 8  }
  0x13   :  { %21 = dma.hbm_to_vmem [thread:$0]  %s11028_s1, 2048, %s16_s12, [#allocation5], %s10305_s20, %s10305_s20, %s10306_s21  }
  0x14   :  { %10300 = dma.done.wait [#allocation5], 2048  }
  0x15   :  { %10301 = vsyncadd [#allocation5], 4294965248  ;;  %v25_v0 = vlaneseq  ;;  %s38_s24 = sld [smem:[#allocation3]]  ;;  %v10307_v6 = vmov 0.0  }
  0x17   :  { %v26_v1 = vshrl.u32 %v25_v0, 7  ;;  %v29_v2 = vand.u32 127, %v25_v0 }
  0x19   :  { %v27_v3 = vadd.s32 8, %v26_v1  ;;  %v10343_v4 = vadd.s32 %v29_v2, %v26_v1 }
  0x1b   :  { %v10345_v5 = vadd.s32 %v29_v2, %v27_v3  ;;  %vm32_vm0 = vcmp.eq.s32.totalorder %v10343_v4, 15  ;;  %p8551_p8 = scmp.ne.s32.totalorder %s38_s24, 1 }
  0x1c   :  { %v10350_v7 = vsel %vm32_vm0, 1.0, %v10307_v6  ;;  %v43_v9 = vld [vmem:[#allocation4] sm:$0xff] (!%p8551_p8)  ;;  %v44_v10 = vld [vmem:[#allocation4 + $0x8] sm:$0xff] (!%p8551_p8)  ;;  %vm45_vm2 = vcmask (!%p8551_p8), 130048   ;;  %v563_v11 = vld [vmem:[#allocation4 + $0x10] sm:$0xff] (!%p8551_p8) }
  0x1d   :  { %vm33_vm1 = vcmp.eq.s32.totalorder %v10345_v5, 15  ;;  %42 = sbr.rel (%p8551_p8) target bundleno = 442 (0x1ba), region = 13  ;;  %v53_v12 = vsel (!%p8551_p8), %vm45_vm2, %v43_v9, 0  ;;  %v56_v13 = vsel (!%p8551_p8), %vm45_vm2, %v44_v10, 0  ;;  %v564_v14 = vld [vmem:[#allocation4 + $0x18] sm:$0xff] (!%p8551_p8)  ;;  %v566_v15 = vsel (!%p8551_p8), %vm45_vm2, %v563_v11, 0 }
  0x1e   :  { %v10355_v8 = vsel %vm33_vm1, 1.0, %v10307_v6  ;;  %v47_v16 = vsel (!%p8551_p8), %vm45_vm2, %v10350_v7, 0  ;;  %v59_v17 = vand.u32 (!%p8551_p8), 4294901760, %v53_v12  ;;  %v62_v18 = vand.u32 (!%p8551_p8), 4294901760, %v56_v13  ;;  %v1077_v53 = vld [vmem:[#allocation4 + $0x20] sm:$0xff] (!%p8551_p8)  ;;  %v1078_v54 = vld [vmem:[#allocation4 + $0x28] sm:$0xff] (!%p8551_p8) }
  0x1f   :  { %v569_v19 = vsel (!%p8551_p8), %vm45_vm2, %v564_v14, 0  ;;  %v572_v20 = vand.u32 (!%p8551_p8), 4294901760, %v566_v15  ;;  %v10363_v22 = vsub.f32 (!%p8551_p8), %v47_v16, %v47_v16  ;;  %v50_v23 = vsel (!%p8551_p8), %vm45_vm2, %v10355_v8, 0  ;;  %v1591_v55 = vld [vmem:[#allocation4 + $0x30] sm:$0xff] (!%p8551_p8)  ;;  %v1592_v56 = vld [vmem:[#allocation4 + $0x38] sm:$0xff] (!%p8551_p8) }
  0x20   :  { %v575_v21 = vand.u32 (!%p8551_p8), 4294901760, %v569_v19  ;;  %v10367_v24 = vpack.c.bf16 (!%p8551_p8), %v62_v18, %v59_v17  ;;  %v10369_v25 = vsub.f32 (!%p8551_p8), %v50_v23, %v50_v23  ;;  %v147_v26 = vsub.f32 (!%p8551_p8), %v53_v12, %v59_v17 }
  0x21   :  { %v154_v27 = vsub.f32 (!%p8551_p8), %v56_v13, %v62_v18  ;;  %v10374_v29 = vand.u32 (!%p8551_p8), 4294901760, %v10363_v22  ;;  %v660_v30 = vsub.f32 (!%p8551_p8), %v566_v15, %v572_v20  ;;  %v1080_v59 = vsel (!%p8551_p8), %vm45_vm2, %v1077_v53, 0 }
  0x22   :  { %v10371_v28 = vpack.c.bf16 (!%p8551_p8), %v575_v21, %v572_v20  ;;  %v667_v31 = vsub.f32 (!%p8551_p8), %v569_v19, %v575_v21  ;;  %9706 = vmatprep.subr.bf16.mxu0 (!%p8551_p8), %v10367_v24  ;;  %v10378_v32 = vand.u32 (!%p8551_p8), 4294901760, %v10369_v25  ;;  %v148_v33 = vand.u32 (!%p8551_p8), 4294901760, %v147_v26 }
  0x23   :  { %v155_v34 = vand.u32 (!%p8551_p8), 4294901760, %v154_v27  ;;  %9708 = vmatpush3.bf16.xpose.msra.mxu0 (!%p8551_p8), %v10367_v24  ;;  %v128_v35 = vsub.f32 (!%p8551_p8), %v10363_v22, %v10374_v29  ;;  %v661_v36 = vand.u32 (!%p8551_p8), 4294901760, %v660_v30  ;;  %v9713_v51 = vpack.c.bf16 (!%p8551_p8), %v154_v27, %v147_v26 }
  0x24   :  { %9730 = vmatprep.subr.bf16.mxu1 %v10371_v28  ;;  %v668_v37 = vand.u32 4294901760, %v667_v31  ;;  %v138_v38 = vsub.f32 %v10369_v25, %v10378_v32  ;;  %v149_v39 = vsub.f32 %v147_v26, %v148_v33  ;;  %v9737_v52 = vpack.c.bf16 %v667_v31, %v660_v30 }
  0x25   :  { %9732 = vmatpush3.bf16.xpose.msra.mxu1 %v10371_v28  ;;  %v156_v40 = vsub.f32 %v154_v27, %v155_v34  ;;  %v10387_v41 = vand.u32 4294901760, %v128_v35  ;;  %v662_v42 = vsub.f32 %v660_v30, %v661_v36  ;;  %v9721_v57 = vpack.c.bf16 %v155_v34, %v148_v33  ;;  %v2105_v33 = vld [vmem:[#allocation4 + $0x40] sm:$0xff]  ;;  %v2106_v34 = vld [vmem:[#allocation4 + $0x48] sm:$0xff]  ;;  %v2619_v35 = vld [vmem:[#allocation4 + $0x50] sm:$0xff] }
  0x26   :  { %v669_v43 = vsub.f32 %v667_v31, %v668_v37  ;;  %v10389_v44 = vand.u32 4294901760, %v138_v38  ;;  %v150_v45 = vand.u32 4294901760, %v149_v39  ;;  %v9745_v58 = vpack.c.bf16 %v668_v37, %v661_v36  ;;  %v2620_v36 = vld [vmem:[#allocation4 + $0x58] sm:$0xff] }
  0x27   :  { %v157_v46 = vand.u32 4294901760, %v156_v40  ;;  %9037 = vmatprep.mubr.f32.mxu0 %v10387_v41  ;;  %9079 = vmatprep.mubr.f32.mxu1 %v10387_v41  ;;  %v663_v47 = vand.u32 4294901760, %v662_v42  ;;  %v1083_v60 = vsel %vm45_vm2, %v1078_v54, 0  ;;  %v1594_v61 = vsel %vm45_vm2, %v1591_v55, 0 }
  0x28   :  { %v670_v48 = vand.u32 4294901760, %v669_v43  ;;  %v1597_v62 = vsel %vm45_vm2, %v1592_v56, 0  ;;  %v1086_v63 = vand.u32 4294901760, %v1080_v59  ;;  %v1089_v0 = vand.u32 4294901760, %v1083_v60 }
  0x29   :  { %v9709_v49 = vpack.c.bf16 %v157_v46, %v150_v45  ;;  %v1600_v1 = vand.u32 4294901760, %v1594_v61  ;;  %v1603_v2 = vand.u32 4294901760, %v1597_v62  ;;  %v2108_v39 = vsel %vm45_vm2, %v2105_v33, 0 }
  0x2a   :  { %v9733_v50 = vpack.c.bf16 %v670_v48, %v663_v47  ;;  %9038 = vmatmul.mubr.f32.vlgmr.msra.gmra.mrb[0].mxu0 %v10389_v44  ;;  %v10417_v3 = vsub.f32 %v1080_v59, %v1086_v63  ;;  %v10419_v6 = vsub.f32 %v1083_v60, %v1089_v0  ;;  %v10437_v15 = vpack.c.bf16 %v1089_v0, %v1086_v63 }
  0x2b   :  { %9710 = vmatprep.subr.bf16.mxu0 %v9709_v49  ;;  %9044 = vmatprep.mubr.msk.f32.mxu0 %vm45_vm2, %v10350_v7  ;;  %v10421_v9 = vsub.f32 %v1594_v61, %v1600_v1  ;;  %v10423_v10 = vsub.f32 %v1597_v62, %v1603_v2  ;;  %v10439_v16 = vpack.c.bf16 %v1603_v2, %v1600_v1  ;;  %v2111_v40 = vsel %vm45_vm2, %v2106_v34, 0 }
  0x2c   :  { %9080 = vmatmul.mubr.f32.vlgmr.msra.gmra.mrb[0].mxu1 %v10389_v44  ;;  %9734 = vmatprep.subr.bf16.mxu1 %v9733_v50  ;;  %v1175_v11 = vand.u32 4294901760, %v10417_v3  ;;  %v1182_v12 = vand.u32 4294901760, %v10419_v6  ;;  %v2622_v42 = vsel %vm45_vm2, %v2619_v35, 0  ;;  %v2625_v43 = vsel %vm45_vm2, %v2620_v36, 0 }
  0x2d   :  { %9712 = vmatpush3.bf16.xpose.msra.mxu0 %v9709_v49  ;;  %9736 = vmatpush3.bf16.xpose.msra.mxu1 %v9733_v50  ;;  %v1689_v13 = vand.u32 4294901760, %v10421_v9  ;;  %v1696_v14 = vand.u32 4294901760, %v10423_v10  ;;  %v2114_v45 = vand.u32 4294901760, %v2108_v39  ;;  %v2117_v46 = vand.u32 4294901760, %v2111_v40 }
  0x2e   :  { %9086 = vmatprep.mubr.msk.f32.mxu1 %vm45_vm2, %v10350_v7  ;;  %9714 = vmatprep.subr.bf16.mxu0 %v9713_v51  ;;  %v1176_v17 = vsub.f32 %v10417_v3, %v1175_v11  ;;  %v1183_v18 = vsub.f32 %v10419_v6, %v1182_v12  ;;  %v9769_v37 = vpack.c.bf16 %v1182_v12, %v1175_v11  ;;  %v2628_v47 = vand.u32 4294901760, %v2622_v42  ;;  %v3133_v11 = vld [vmem:[#allocation4 + $0x60] sm:$0xff]  ;;  %v3134_v12 = vld [vmem:[#allocation4 + $0x68] sm:$0xff] }
  0x2f   :  { %9738 = vmatprep.subr.bf16.mxu1 %v9737_v52  ;;  %v1690_v19 = vsub.f32 %v10421_v9, %v1689_v13  ;;  %v1697_v20 = vsub.f32 %v10423_v10, %v1696_v14  ;;  %v9793_v38 = vpack.c.bf16 %v1696_v14, %v1689_v13  ;;  %v2631_v48 = vand.u32 4294901760, %v2625_v43  ;;  %v3647_v13 = vld [vmem:[#allocation4 + $0x70] sm:$0xff]  ;;  %v3648_v14 = vld [vmem:[#allocation4 + $0x78] sm:$0xff] }
  0x30   :  { %v1177_v21 = vand.u32 4294901760, %v1176_v17  ;;  %v1184_v23 = vand.u32 4294901760, %v1183_v18  ;;  %v10493_v49 = vsub.f32 %v2108_v39, %v2114_v45  ;;  %v10495_v50 = vsub.f32 %v2111_v40, %v2117_v46 }
  0x31   :  { %v1691_v26 = vand.u32 4294901760, %v1690_v19  ;;  %v1698_v27 = vand.u32 4294901760, %v1697_v20  ;;  %v3136_v17 = vsel %vm45_vm2, %v3133_v11, 0  ;;  %v3139_v18 = vsel %vm45_vm2, %v3134_v12, 0 }
  0x32   :  { %v9757_v30 = vpack.c.bf16 %v1184_v23, %v1177_v21  ;;  %v2203_v53 = vand.u32 4294901760, %v10493_v49  ;;  %v2210_v54 = vand.u32 4294901760, %v10495_v50  ;;  %v3650_v19 = vsel %vm45_vm2, %v3647_v13, 0 }
  0x33   :  { %v9781_v31 = vpack.c.bf16 %v1698_v27, %v1691_v26  ;;  %v3653_v20 = vsel %vm45_vm2, %v3648_v14, 0  ;;  %v3142_v21 = vand.u32 4294901760, %v3136_v17  ;;  %v3145_v23 = vand.u32 4294901760, %v3139_v18 }
  0x34   :  { %9045 = vmatmul.mubr.msk.f32.vlgmr.msra.gmra.mrb[0].mxu0 %vm45_vm2, %v10355_v8  ;;  %9087 = vmatmul.mubr.msk.f32.vlgmr.msra.gmra.mrb[0].mxu1 %vm45_vm2, %v10355_v8  ;;  %v2204_v59 = vsub.f32 %v10493_v49, %v2203_v53  ;;  %v2211_v60 = vsub.f32 %v10495_v50, %v2210_v54  ;;  %v3656_v26 = vand.u32 4294901760, %v3650_v19  ;;  %v3659_v27 = vand.u32 4294901760, %v3653_v20 }
  0x35   :  { %9716 = vmatpush3.bf16.xpose.msra.mxu0 %v9713_v51  ;;  %9740 = vmatpush3.bf16.xpose.msra.mxu1 %v9737_v52  ;;  %v10497_v51 = vsub.f32 %v2622_v42, %v2628_v47  ;;  %v10499_v52 = vsub.f32 %v2625_v43, %v2631_v48 }
  0x36   :  { %9051 = vmatprep.mubr.f32.mxu0 %v10363_v22  ;;  %9093 = vmatprep.mubr.f32.mxu1 %v10363_v22  ;;  %v2205_v63 = vand.u32 4294901760, %v2204_v59  ;;  %v2212_v0 = vand.u32 4294901760, %v2211_v60 }
  0x37   :  { %9718 = vmatprep.subr.bf16.mxu0 %v10367_v24  ;;  %9742 = vmatprep.subr.bf16.mxu1 %v10371_v28  ;;  %v2717_v55 = vand.u32 4294901760, %v10497_v51  ;;  %v2724_v56 = vand.u32 4294901760, %v10499_v52 }
  0x39   :  { %v2718_v61 = vsub.f32 %v10497_v51, %v2717_v55  ;;  %v2725_v62 = vsub.f32 %v10499_v52, %v2724_v56 }
  0x3b   :  { %v2719_v1 = vand.u32 4294901760, %v2718_v61  ;;  %v2726_v2 = vand.u32 4294901760, %v2725_v62 }
  0x3c   :  { %9052 = vmatmul.mubr.f32.vlgmr.msra.gmra.mrb[0].mxu0 %v10369_v25  ;;  %9094 = vmatmul.mubr.f32.vlgmr.msra.gmra.mrb[0].mxu1 %v10369_v25 }
  0x3d   :  { %9720 = vmatpush3.bf16.xpose.msra.mxu0 %v10367_v24  ;;  %9744 = vmatpush3.bf16.xpose.msra.mxu1 %v10371_v28 }
  0x3e   :  { %9058 = vmatprep.mubr.f32.mxu0 %v10374_v29  ;;  %9100 = vmatprep.mubr.f32.mxu1 %v10374_v29 }
  0x3f   :  { %9722 = vmatprep.subr.bf16.mxu0 %v9721_v57  ;;  %9746 = vmatprep.subr.bf16.mxu1 %v9745_v58 }
  0x44   :  { %9059 = vmatmul.mubr.f32.vlgmr.msra.gmra.mrb[0].mxu0 %v10378_v32  ;;  %9101 = vmatmul.mubr.f32.vlgmr.msra.gmra.mrb[0].mxu1 %v10378_v32 }
  0x45   :  { %9724 = vmatpush3.bf16.xpose.msra.mxu0 %v9721_v57  ;;  %9748 = vmatpush3.bf16.xpose.msra.mxu1 %v9745_v58  ;;  %v10513_v57 = vpack.c.bf16 %v2117_v46, %v2114_v45  ;;  %v10515_v58 = vpack.c.bf16 %v2631_v48, %v2628_v47 }
  0x46   :  { %9065 = vmatprep.mubr.msk.f32.mxu0 %vm45_vm2, %v10350_v7  ;;  %9107 = vmatprep.mubr.msk.f32.mxu1 %vm45_vm2, %v10350_v7 }
  0x47   :  { %9726 = vmatprep.subr.bf16.mxu0 %v10367_v24  ;;  %9750 = vmatprep.subr.bf16.mxu1 %v10371_v28 }
  0x4c   :  { %9066 = vmatmul.mubr.msk.f32.vlgmr.msra.gmra.mrb[0].mxu0 %vm45_vm2, %v10355_v8  ;;  %9108 = vmatmul.mubr.msk.f32.vlgmr.msra.gmra.mrb[0].mxu1 %vm45_vm2, %v10355_v8 }
  0x4d   :  { %9728 = vmatpush3.bf16.xpose.msra.mxu0 %v10367_v24  ;;  %9752 = vmatpush3.bf16.xpose.msra.mxu1 %v10371_v28  ;;  %v9761_v24 = vpack.c.bf16 %v10419_v6, %v10417_v3  ;;  %v9785_v28 = vpack.c.bf16 %v10423_v10, %v10421_v9  ;;  %v9805_v3 = vpack.c.bf16 %v2212_v0, %v2205_v63 }
  0x4e   :  { %9072 = vmatprep.mubr.msk.f32.mxu0 %vm45_vm2, %v10350_v7  ;;  %9114 = vmatprep.mubr.msk.f32.mxu1 %vm45_vm2, %v10350_v7  ;;  %v9829_v6 = vpack.c.bf16 %v2726_v2, %v2719_v1  ;;  %v9809_v9 = vpack.c.bf16 %v10495_v50, %v10493_v49  ;;  %v9833_v10 = vpack.c.bf16 %v10499_v52, %v10497_v51 }
  0x4f   :  { %9754 = vmatprep.subr.bf16.mxu0 %v10437_v15  ;;  %9778 = vmatprep.subr.bf16.mxu1 %v10439_v16 }
  0x54   :  { %9073 = vmatmul.mubr.msk.f32.vlgmr.msra.gmra.mrb[0].mxu0 %vm45_vm2, %v10355_v8  ;;  %9115 = vmatmul.mubr.msk.f32.vlgmr.msra.gmra.mrb[0].mxu1 %vm45_vm2, %v10355_v8 }
  0x55   :  { %9756 = vmatpush3.bf16.xpose.msra.mxu0 %v10437_v15  ;;  %9780 = vmatpush3.bf16.xpose.msra.mxu1 %v10439_v16 }
  0x56   :  { %9121 = vmatprep.mubr.f32.mxu0 %v10387_v41  ;;  %9163 = vmatprep.mubr.f32.mxu1 %v10387_v41 }
  0x57   :  { %9758 = vmatprep.subr.bf16.mxu0 %v9757_v30  ;;  %9782 = vmatprep.subr.bf16.mxu1 %v9781_v31 }
  0x5c   :  { %9122 = vmatmul.mubr.f32.vlgmr.msra.gmra.mrb[2].mxu0 %v10389_v44  ;;  %9164 = vmatmul.mubr.f32.vlgmr.msra.gmra.mrb[2].mxu1 %v10389_v44 }
  0x5d   :  { %9760 = vmatpush3.bf16.xpose.msra.mxu0 %v9757_v30  ;;  %9784 = vmatpush3.bf16.xpose.msra.mxu1 %v9781_v31  ;;  %v10569_v30 = vsub.f32 %v3136_v17, %v3142_v21  ;;  %v3237_v31 = vsub.f32 %v3139_v18, %v3145_v23 }
  0x5e   :  { %9128 = vmatprep.mubr.msk.f32.mxu0 %vm45_vm2, %v10350_v7  ;;  %9170 = vmatprep.mubr.msk.f32.mxu1 %vm45_vm2, %v10350_v7 }
  0x5f   :  { %9762 = vmatprep.subr.bf16.mxu0 %v9761_v24  ;;  %9786 = vmatprep.subr.bf16.mxu1 %v9785_v28  ;;  %v3231_v33 = vand.u32 4294901760, %v10569_v30  ;;  %v3238_v34 = vand.u32 4294901760, %v3237_v31  ;;  %v9857_v51 = vpack.c.bf16 %v3237_v31, %v10569_v30 }
  0x61   :  { %v3232_v39 = vsub.f32 %v10569_v30, %v3231_v33  ;;  %v3239_v40 = vsub.f32 %v3237_v31, %v3238_v34 }
  0x63   :  { %v3233_v45 = vand.u32 4294901760, %v3232_v39  ;;  %v3240_v46 = vand.u32 4294901760, %v3239_v40 }
  0x64   :  { %9129 = vmatmul.mubr.msk.f32.vlgmr.msra.gmra.mrb[2].mxu0 %vm45_vm2, %v10355_v8  ;;  %9171 = vmatmul.mubr.msk.f32.vlgmr.msra.gmra.mrb[2].mxu1 %vm45_vm2, %v10355_v8 }
  0x65   :  { %9764 = vmatpush3.bf16.xpose.msra.mxu0 %v9761_v24  ;;  %9788 = vmatpush3.bf16.xpose.msra.mxu1 %v9785_v28  ;;  %v3744_v24 = vsub.f32 %v3650_v19, %v3656_v26  ;;  %v3751_v28 = vsub.f32 %v3653_v20, %v3659_v27  ;;  %v9853_v49 = vpack.c.bf16 %v3240_v46, %v3233_v45 }
  0x66   :  { %9135 = vmatprep.mubr.f32.mxu0 %v10363_v22  ;;  %9177 = vmatprep.mubr.f32.mxu1 %v10363_v22 }
  0x67   :  { %9766 = vmatprep.subr.bf16.mxu0 %v10437_v15  ;;  %9790 = vmatprep.subr.bf16.mxu1 %v10439_v16  ;;  %v3745_v35 = vand.u32 4294901760, %v3744_v24  ;;  %v3752_v36 = vand.u32 4294901760, %v3751_v28  ;;  %v9881_v52 = vpack.c.bf16 %v3751_v28, %v3744_v24 }
  0x69   :  { %v3746_v42 = vsub.f32 %v3744_v24, %v3745_v35  ;;  %v3753_v43 = vsub.f32 %v3751_v28, %v3752_v36 }
  0x6b   :  { %v3747_v47 = vand.u32 4294901760, %v3746_v42  ;;  %v3754_v48 = vand.u32 4294901760, %v3753_v43 }
  0x6c   :  { %9136 = vmatmul.mubr.f32.vlgmr.msra.gmra.mrb[2].mxu0 %v10369_v25  ;;  %9178 = vmatmul.mubr.f32.vlgmr.msra.gmra.mrb[2].mxu1 %v10369_v25 }
  0x6d   :  { %9768 = vmatpush3.bf16.xpose.msra.mxu0 %v10437_v15  ;;  %9792 = vmatpush3.bf16.xpose.msra.mxu1 %v10439_v16  ;;  %v9877_v50 = vpack.c.bf16 %v3754_v48, %v3747_v47 }
  0x6e   :  { %9142 = vmatprep.mubr.f32.mxu0 %v10374_v29  ;;  %9184 = vmatprep.mubr.f32.mxu1 %v10374_v29 }
  0x6f   :  { %9770 = vmatprep.subr.bf16.mxu0 %v9769_v37  ;;  %9794 = vmatprep.subr.bf16.mxu1 %v9793_v38 }
  0x74   :  { %9143 = vmatmul.mubr.f32.vlgmr.msra.gmra.mrb[2].mxu0 %v10378_v32  ;;  %9185 = vmatmul.mubr.f32.vlgmr.msra.gmra.mrb[2].mxu1 %v10378_v32 }
  0x75   :  { %9772 = vmatpush3.bf16.xpose.msra.mxu0 %v9769_v37  ;;  %9796 = vmatpush3.bf16.xpose.msra.mxu1 %v9793_v38  ;;  %v10580_v37 = vpack.c.bf16 %v3145_v23, %v3142_v21  ;;  %v10582_v38 = vpack.c.bf16 %v3659_v27, %v3656_v26 }
  0x76   :  { %9149 = vmatprep.mubr.msk.f32.mxu0 %vm45_vm2, %v10350_v7  ;;  %9191 = vmatprep.mubr.msk.f32.mxu1 %vm45_vm2, %v10350_v7 }
  0x77   :  { %9774 = vmatprep.subr.bf16.mxu0 %v10437_v15  ;;  %9798 = vmatprep.subr.bf16.mxu1 %v10439_v16 }
  0x7c   :  { %9150 = vmatmul.mubr.msk.f32.vlgmr.msra.gmra.mrb[2].mxu0 %vm45_vm2, %v10355_v8  ;;  %9192 = vmatmul.mubr.msk.f32.vlgmr.msra.gmra.mrb[2].mxu1 %vm45_vm2, %v10355_v8 }
  0x7d   :  { %9776 = vmatpush3.bf16.xpose.msra.mxu0 %v10437_v15  ;;  %9800 = vmatpush3.bf16.xpose.msra.mxu1 %v10439_v16  ;;  %v9817_v15 = vpack.c.bf16 %v2210_v54, %v2203_v53  ;;  %v9841_v16 = vpack.c.bf16 %v2724_v56, %v2717_v55 }
  0x7e   :  { %9156 = vmatprep.mubr.msk.f32.mxu0 %vm45_vm2, %v10350_v7  ;;  %9198 = vmatprep.mubr.msk.f32.mxu1 %vm45_vm2, %v10350_v7 }
  0x7f   :  { %9802 = vmatprep.subr.bf16.mxu0 %v10513_v57  ;;  %9826 = vmatprep.subr.bf16.mxu1 %v10515_v58 }
  0x84   :  { %9157 = vmatmul.mubr.msk.f32.vlgmr.msra.gmra.mrb[2].mxu0 %vm45_vm2, %v10355_v8  ;;  %9199 = vmatmul.mubr.msk.f32.vlgmr.msra.gmra.mrb[2].mxu1 %vm45_vm2, %v10355_v8 }
  0x85   :  { %9804 = vmatpush3.bf16.xpose.msra.mxu0 %v10513_v57  ;;  %9828 = vmatpush3.bf16.xpose.msra.mxu1 %v10515_v58 }
  0x86   :  { %9205 = vmatprep.mubr.f32.mxu0 %v10387_v41  ;;  %9247 = vmatprep.mubr.f32.mxu1 %v10387_v41 }
  0x87   :  { %9806 = vmatprep.subr.bf16.mxu0 %v9805_v3  ;;  %9830 = vmatprep.subr.bf16.mxu1 %v9829_v6 }
  0x8c   :  { %9206 = vmatmul.mubr.f32.vlgmr.msra.gmra.mrb[4].mxu0 %v10389_v44  ;;  %9248 = vmatmul.mubr.f32.vlgmr.msra.gmra.mrb[4].mxu1 %v10389_v44 }
  0x8d   :  { %9808 = vmatpush3.bf16.xpose.msra.mxu0 %v9805_v3  ;;  %9832 = vmatpush3.bf16.xpose.msra.mxu1 %v9829_v6 }
  0x8e   :  { %9212 = vmatprep.mubr.msk.f32.mxu0 %vm45_vm2, %v10350_v7  ;;  %9254 = vmatprep.mubr.msk.f32.mxu1 %vm45_vm2, %v10350_v7 }
  0x8f   :  { %9810 = vmatprep.subr.bf16.mxu0 %v9809_v9  ;;  %9834 = vmatprep.subr.bf16.mxu1 %v9833_v10 }
  0x94   :  { %9213 = vmatmul.mubr.msk.f32.vlgmr.msra.gmra.mrb[4].mxu0 %vm45_vm2, %v10355_v8  ;;  %9255 = vmatmul.mubr.msk.f32.vlgmr.msra.gmra.mrb[4].mxu1 %vm45_vm2, %v10355_v8 }
  0x95   :  { %9812 = vmatpush3.bf16.xpose.msra.mxu0 %v9809_v9  ;;  %9836 = vmatpush3.bf16.xpose.msra.mxu1 %v9833_v10 }
  0x96   :  { %9219 = vmatprep.mubr.f32.mxu0 %v10363_v22  ;;  %9261 = vmatprep.mubr.f32.mxu1 %v10363_v22 }
  0x97   :  { %9814 = vmatprep.subr.bf16.mxu0 %v10513_v57  ;;  %9838 = vmatprep.subr.bf16.mxu1 %v10515_v58 }
  0x9c   :  { %9220 = vmatmul.mubr.f32.vlgmr.msra.gmra.mrb[4].mxu0 %v10369_v25  ;;  %9262 = vmatmul.mubr.f32.vlgmr.msra.gmra.mrb[4].mxu1 %v10369_v25 }
  0x9d   :  { %9816 = vmatpush3.bf16.xpose.msra.mxu0 %v10513_v57  ;;  %9840 = vmatpush3.bf16.xpose.msra.mxu1 %v10515_v58 }
  0x9e   :  { %9226 = vmatprep.mubr.f32.mxu0 %v10374_v29  ;;  %9268 = vmatprep.mubr.f32.mxu1 %v10374_v29 }
  0x9f   :  { %9818 = vmatprep.subr.bf16.mxu0 %v9817_v15  ;;  %9842 = vmatprep.subr.bf16.mxu1 %v9841_v16 }
  0xa4   :  { %9227 = vmatmul.mubr.f32.vlgmr.msra.gmra.mrb[4].mxu0 %v10378_v32  ;;  %9269 = vmatmul.mubr.f32.vlgmr.msra.gmra.mrb[4].mxu1 %v10378_v32 }
  0xa5   :  { %9820 = vmatpush3.bf16.xpose.msra.mxu0 %v9817_v15  ;;  %9844 = vmatpush3.bf16.xpose.msra.mxu1 %v9841_v16 }
  0xa6   :  { %9233 = vmatprep.mubr.msk.f32.mxu0 %vm45_vm2, %v10350_v7  ;;  %9275 = vmatprep.mubr.msk.f32.mxu1 %vm45_vm2, %v10350_v7 }
  0xa7   :  { %9822 = vmatprep.subr.bf16.mxu0 %v10513_v57  ;;  %9846 = vmatprep.subr.bf16.mxu1 %v10515_v58 }
  0xac   :  { %9234 = vmatmul.mubr.msk.f32.vlgmr.msra.gmra.mrb[4].mxu0 %vm45_vm2, %v10355_v8  ;;  %9276 = vmatmul.mubr.msk.f32.vlgmr.msra.gmra.mrb[4].mxu1 %vm45_vm2, %v10355_v8 }
  0xad   :  { %9824 = vmatpush3.bf16.xpose.msra.mxu0 %v10513_v57  ;;  %9848 = vmatpush3.bf16.xpose.msra.mxu1 %v10515_v58 }
  0xae   :  { %9240 = vmatprep.mubr.msk.f32.mxu0 %vm45_vm2, %v10350_v7  ;;  %9282 = vmatprep.mubr.msk.f32.mxu1 %vm45_vm2, %v10350_v7 }
  0xaf   :  { %9850 = vmatprep.subr.bf16.mxu0 %v10580_v37  ;;  %9874 = vmatprep.subr.bf16.mxu1 %v10582_v38 }
  0xb4   :  { %9241 = vmatmul.mubr.msk.f32.vlgmr.msra.gmra.mrb[4].mxu0 %vm45_vm2, %v10355_v8  ;;  %9283 = vmatmul.mubr.msk.f32.vlgmr.msra.gmra.mrb[4].mxu1 %vm45_vm2, %v10355_v8 }
  0xb5   :  { %9852 = vmatpush3.bf16.xpose.msra.mxu0 %v10580_v37  ;;  %9876 = vmatpush3.bf16.xpose.msra.mxu1 %v10582_v38 }
  0xb6   :  { %9289 = vmatprep.mubr.f32.mxu0 %v10387_v41  ;;  %9331 = vmatprep.mubr.f32.mxu1 %v10387_v41  ;;  %v9865_v41 = vpack.c.bf16 %v3238_v34, %v3231_v33 }
  0xb7   :  { %9854 = vmatprep.subr.bf16.mxu0 %v9853_v49  ;;  %9878 = vmatprep.subr.bf16.mxu1 %v9877_v50 }
  0xbc   :  { %9290 = vmatmul.mubr.f32.vlgmr.msra.gmra.mrb[6].mxu0 %v10389_v44  ;;  %9332 = vmatmul.mubr.f32.vlgmr.msra.gmra.mrb[6].mxu1 %v10389_v44  ;;  %v9889_v44 = vpack.c.bf16 %v3752_v36, %v3745_v35 }
  0xbd   :  { %9856 = vmatpush3.bf16.xpose.msra.mxu0 %v9853_v49  ;;  %9880 = vmatpush3.bf16.xpose.msra.mxu1 %v9877_v50 }
  0xbe   :  { %9296 = vmatprep.mubr.msk.f32.mxu0 %vm45_vm2, %v10350_v7  ;;  %9338 = vmatprep.mubr.msk.f32.mxu1 %vm45_vm2, %v10350_v7 }
  0xbf   :  { %9858 = vmatprep.subr.bf16.mxu0 %v9857_v51  ;;  %9882 = vmatprep.subr.bf16.mxu1 %v9881_v52 }
  0xc4   :  { %9297 = vmatmul.mubr.msk.f32.vlgmr.msra.gmra.mrb[6].mxu0 %vm45_vm2, %v10355_v8  ;;  %9339 = vmatmul.mubr.msk.f32.vlgmr.msra.gmra.mrb[6].mxu1 %vm45_vm2, %v10355_v8 }
  0xc5   :  { %9860 = vmatpush3.bf16.xpose.msra.mxu0 %v9857_v51  ;;  %9884 = vmatpush3.bf16.xpose.msra.mxu1 %v9881_v52 }
  0xc6   :  { %9303 = vmatprep.mubr.f32.mxu0 %v10363_v22  ;;  %9345 = vmatprep.mubr.f32.mxu1 %v10363_v22 }
  0xc7   :  { %9862 = vmatprep.subr.bf16.mxu0 %v10580_v37  ;;  %9886 = vmatprep.subr.bf16.mxu1 %v10582_v38 }
  0xcc   :  { %9304 = vmatmul.mubr.f32.vlgmr.msra.gmra.mrb[6].mxu0 %v10369_v25  ;;  %9346 = vmatmul.mubr.f32.vlgmr.msra.gmra.mrb[6].mxu1 %v10369_v25 }
  0xcd   :  { %9864 = vmatpush3.bf16.xpose.msra.mxu0 %v10580_v37  ;;  %9888 = vmatpush3.bf16.xpose.msra.mxu1 %v10582_v38 }
  0xce   :  { %9310 = vmatprep.mubr.f32.mxu0 %v10374_v29  ;;  %9352 = vmatprep.mubr.f32.mxu1 %v10374_v29 }
  0xcf   :  { %9866 = vmatprep.subr.bf16.mxu0 %v9865_v41  ;;  %9890 = vmatprep.subr.bf16.mxu1 %v9889_v44 }
  0xd4   :  { %9311 = vmatmul.mubr.f32.vlgmr.msra.gmra.mrb[6].mxu0 %v10378_v32  ;;  %9353 = vmatmul.mubr.f32.vlgmr.msra.gmra.mrb[6].mxu1 %v10378_v32 }
  0xd5   :  { %9868 = vmatpush3.bf16.xpose.msra.mxu0 %v9865_v41  ;;  %9892 = vmatpush3.bf16.xpose.msra.mxu1 %v9889_v44 }
  0xd6   :  { %9317 = vmatprep.mubr.msk.f32.mxu0 %vm45_vm2, %v10350_v7  ;;  %9359 = vmatprep.mubr.msk.f32.mxu1 %vm45_vm2, %v10350_v7 }
  0xd7   :  { %9870 = vmatprep.subr.bf16.mxu0 %v10580_v37  ;;  %9894 = vmatprep.subr.bf16.mxu1 %v10582_v38 }
  0xdc   :  { %9318 = vmatmul.mubr.msk.f32.vlgmr.msra.gmra.mrb[6].mxu0 %vm45_vm2, %v10355_v8  ;;  %9360 = vmatmul.mubr.msk.f32.vlgmr.msra.gmra.mrb[6].mxu1 %vm45_vm2, %v10355_v8 }
  0xdd   :  { %9872 = vmatpush3.bf16.xpose.msra.mxu0 %v10580_v37  ;;  %9896 = vmatpush3.bf16.xpose.msra.mxu1 %v10582_v38 }
  0xde   :  { %9324 = vmatprep.mubr.msk.f32.mxu0 %vm45_vm2, %v10350_v7  ;;  %9366 = vmatprep.mubr.msk.f32.mxu1 %vm45_vm2, %v10350_v7 }
  0xe4   :  { %9325 = vmatmul.mubr.msk.f32.vlgmr.msra.gmra.mrb[6].mxu0 %vm45_vm2, %v10355_v8  ;;  %9367 = vmatmul.mubr.msk.f32.vlgmr.msra.gmra.mrb[6].mxu1 %vm45_vm2, %v10355_v8 }
 0x127   :  { %v9074_v22 = vpop.f32.mrb[0].mxu0  ;;  %v9116_v25 = vpop.f32.mrb[0].mxu1 }
 0x128   :  { %561 = vst.msk [vmem:[#allocation7 + $0x8] sm:$0xff] %vm45_vm2, %v9074_v22  ;;  %1075 = vst.msk [vmem:[#allocation7 + $0x18] sm:$0xff] %vm45_vm2, %v9116_v25  ;;  %v550_v29 = vpop.f32.mrb[1].mxu0  ;;  %v1063_v32 = vpop.f32.mrb[1].mxu1 }
 0x129   :  { %560 = vst.msk [vmem:[#allocation7] sm:$0xff] %vm45_vm2, %v550_v29  ;;  %1074 = vst.msk [vmem:[#allocation7 + $0x10] sm:$0xff] %vm45_vm2, %v1063_v32 }
 0x157   :  { %v9158_v53 = vpop.f32.mrb[2].mxu0  ;;  %v9200_v54 = vpop.f32.mrb[2].mxu1 }
 0x158   :  { %1589 = vst.msk [vmem:[#allocation7 + $0x28] sm:$0xff] %vm45_vm2, %v9158_v53  ;;  %2103 = vst.msk [vmem:[#allocation7 + $0x38] sm:$0xff] %vm45_vm2, %v9200_v54  ;;  %v1577_v55 = vpop.f32.mrb[3].mxu0  ;;  %v2091_v56 = vpop.f32.mrb[3].mxu1 }
 0x159   :  { %1588 = vst.msk [vmem:[#allocation7 + $0x20] sm:$0xff] %vm45_vm2, %v1577_v55  ;;  %2102 = vst.msk [vmem:[#allocation7 + $0x30] sm:$0xff] %vm45_vm2, %v2091_v56 }
 0x187   :  { %v9242_v57 = vpop.f32.mrb[4].mxu0  ;;  %v9284_v58 = vpop.f32.mrb[4].mxu1 }
 0x188   :  { %2617 = vst.msk [vmem:[#allocation7 + $0x48] sm:$0xff] %vm45_vm2, %v9242_v57  ;;  %3131 = vst.msk [vmem:[#allocation7 + $0x58] sm:$0xff] %vm45_vm2, %v9284_v58  ;;  %v2605_v59 = vpop.f32.mrb[5].mxu0  ;;  %v3119_v60 = vpop.f32.mrb[5].mxu1 }
 0x189   :  { %2616 = vst.msk [vmem:[#allocation7 + $0x40] sm:$0xff] %vm45_vm2, %v2605_v59  ;;  %3130 = vst.msk [vmem:[#allocation7 + $0x50] sm:$0xff] %vm45_vm2, %v3119_v60 }
 0x1b7   :  { %v9326_v61 = vpop.f32.mrb[6].mxu0  ;;  %v9368_v62 = vpop.f32.mrb[6].mxu1 }
 0x1b8   :  { %3645 = vst.msk [vmem:[#allocation7 + $0x68] sm:$0xff] %vm45_vm2, %v9326_v61  ;;  %4159 = vst.msk [vmem:[#allocation7 + $0x78] sm:$0xff] %vm45_vm2, %v9368_v62  ;;  %v3633_v63 = vpop.f32.mrb[7].mxu0  ;;  %v4147_v0 = vpop.f32.mrb[7].mxu1 }
 0x1b9   :  { %3644 = vst.msk [vmem:[#allocation7 + $0x60] sm:$0xff] %vm45_vm2, %v3633_v63  ;;  %4158 = vst.msk [vmem:[#allocation7 + $0x70] sm:$0xff] %vm45_vm2, %v4147_v0 }
 0x1ba PF:  { %s4160_s1 = sld [smem:[#allocation3]] }
 0x1c0   :  { %p8600_p9 = scmp.ne.s32.totalorder %s4160_s1, 0 }
 0x1c1   :  { %v4711_v1 = vld [vmem:[#allocation4 + $0x10] sm:$0xff] (!%p8600_p9)  ;;  %v4165_v2 = vld [vmem:[#allocation4] sm:$0xff] (!%p8600_p9)  ;;  %v4712_v3 = vld [vmem:[#allocation4 + $0x18] sm:$0xff] (!%p8600_p9)  ;;  %v4295_v14 = vsub.f32 (!%p8600_p9), %v10350_v7, %v10350_v7  ;;  %v4302_v15 = vsub.f32 (!%p8600_p9), %v10355_v8, %v10355_v8  ;;  %v10308_v16 = vmov (!%p8600_p9), 1.0|1.0   ;;  %vm4199_vm4 = vcmask (!%p8600_p9), 130048  }
 0x1c2   :  { %4164 = sbr.rel (%p8600_p9) target bundleno = 980 (0x3d4), region = 17  ;;  %4713 = vxpose.xlu1.b32.start [1/2] (short) (narrow) (!%p8600_p9), %v4711_v1, 16  ;;  %4167 = vxpose.xlu0.b32.start [1/2] (short) (narrow) (!%p8600_p9), %v4165_v2, 16  ;;  %v4166_v6 = vld [vmem:[#allocation4 + $0x8] sm:$0xff] (!%p8600_p9)  ;;  %v5803_v9 = vld [vmem:[#allocation4 + $0x30] sm:$0xff] (!%p8600_p9)  ;;  %v5257_v10 = vld [vmem:[#allocation4 + $0x20] sm:$0xff] (!%p8600_p9) }
 0x1c3   :  { %v5804_v11 = vld [vmem:[#allocation4 + $0x38] sm:$0xff] (!%p8600_p9)  ;;  %v5258_v12 = vld [vmem:[#allocation4 + $0x28] sm:$0xff] (!%p8600_p9)  ;;  %vm10668_vm3 = vmpackc.low (!%p8600_p9), %vm33_vm1, %vm32_vm0  ;;  %v4296_v4 = vand.u32 (!%p8600_p9), 4294901760, %v4295_v14  ;;  %v4303_v5 = vand.u32 (!%p8600_p9), 4294901760, %v4302_v15  ;;  %v10690_v27 = vpack.c.bf16 (!%p8600_p9), %v4302_v15, %v4295_v14 }
 0x1c4   :  { %9898 = vmatprep.subr.msk.bf16.mxu0 (!%p8600_p9), %vm10668_vm3, %v10308_v16  ;;  %9922 = vmatprep.subr.msk.bf16.mxu1 (!%p8600_p9), %vm10668_vm3, %v10308_v16  ;;  %v6895_v17 = vld [vmem:[#allocation4 + $0x50] sm:$0xff] (!%p8600_p9)  ;;  %v6349_v18 = vld [vmem:[#allocation4 + $0x40] sm:$0xff] (!%p8600_p9)  ;;  %v6896_v21 = vld [vmem:[#allocation4 + $0x58] sm:$0xff] (!%p8600_p9) }
 0x1c5   :  { %9900 = vmatpush3.bf16.msk.msra.mxu0 (!%p8600_p9), %vm10668_vm3, %v10308_v16  ;;  %9924 = vmatpush3.bf16.msk.msra.mxu1 (!%p8600_p9), %vm10668_vm3, %v10308_v16  ;;  %v4297_v7 = vsub.f32 (!%p8600_p9), %v4295_v14, %v4296_v4  ;;  %v4304_v8 = vsub.f32 (!%p8600_p9), %v4302_v15, %v4303_v5  ;;  %v6350_v23 = vld [vmem:[#allocation4 + $0x48] sm:$0xff] (!%p8600_p9)  ;;  %v7987_v30 = vld [vmem:[#allocation4 + $0x70] sm:$0xff] (!%p8600_p9)  ;;  %v7441_v31 = vld [vmem:[#allocation4 + $0x60] sm:$0xff] (!%p8600_p9)  ;;  %v10694_v33 = vpack.c.bf16 (!%p8600_p9), %v4303_v5, %v4296_v4 }
 0x1c6   :  { %4714 = vxpose.xlu1.b32.end [2/2] (short) (narrow) (!%p8600_p9), %v4712_v3, 16  ;;  %4168 = vxpose.xlu0.b32.end [2/2] (short) (narrow) (!%p8600_p9), %v4166_v6, 16  ;;  %v7988_v24 = vld [vmem:[#allocation4 + $0x78] sm:$0xff] (!%p8600_p9)  ;;  %v7442_v28 = vld [vmem:[#allocation4 + $0x68] sm:$0xff] (!%p8600_p9) }
 0x1c7   :  { %v4298_v19 = vand.u32 (!%p8600_p9), 4294901760, %v4297_v7  ;;  %v4305_v20 = vand.u32 (!%p8600_p9), 4294901760, %v4304_v8 }
 0x1c9   :  { %v10688_v26 = vpack.c.bf16 %v4305_v20, %v4298_v19 }
 0x1ca   :  { %5805 = vxpose.xlu1.b32.start [1/2] (short) (narrow) %v5803_v9, 16  ;;  %5259 = vxpose.xlu0.b32.start [1/2] (short) (narrow) %v5257_v10, 16 }
 0x1cb   :  { %9902 = vmatprep.subr.bf16.mxu0 %v10688_v26  ;;  %9926 = vmatprep.subr.bf16.mxu1 %v10688_v26 }
 0x1ce   :  { %5806 = vxpose.xlu1.b32.end [2/2] (short) (narrow) %v5804_v11, 16  ;;  %5260 = vxpose.xlu0.b32.end [2/2] (short) (narrow) %v5258_v12, 16 }
 0x1d2   :  { %6897 = vxpose.xlu1.b32.start [1/2] (short) (narrow) %v6895_v17, 16  ;;  %6351 = vxpose.xlu0.b32.start [1/2] (short) (narrow) %v6349_v18, 16 }
 0x1d6   :  { %6898 = vxpose.xlu1.b32.end [2/2] (short) (narrow) %v6896_v21, 16  ;;  %6352 = vxpose.xlu0.b32.end [2/2] (short) (narrow) %v6350_v23, 16 }
 0x1da   :  { %7989 = vxpose.xlu1.b32.start [1/2] (short) (narrow) %v7987_v30, 16  ;;  %7443 = vxpose.xlu0.b32.start [1/2] (short) (narrow) %v7441_v31, 16 }
 0x1de   :  { %7990 = vxpose.xlu1.b32.end [2/2] (short) (narrow) %v7988_v24, 16  ;;  %7444 = vxpose.xlu0.b32.end [2/2] (short) (narrow) %v7442_v28, 16 }
 0x242   :  { %v4729_v34 = vpop.trf.xlu1  ;;  %v4183_v35 = vpop.trf.xlu0 }
 0x243   :  { %v4746_v36 = vsel %vm4199_vm4, %v4729_v34, 0  ;;  %v4201_v37 = vsel %vm4199_vm4, %v4183_v35, 0 }
 0x244   :  { %v10698_v38 = vand.u32 4294901760, %v4746_v36  ;;  %v10700_v39 = vand.u32 4294901760, %v4201_v37 }
 0x246   :  { %v4819_v40 = vsub.f32 %v4746_v36, %v10698_v38  ;;  %v4274_v42 = vsub.f32 %v4201_v37, %v10700_v39  ;;  %v4730_v43 = vpop.trf.xlu1  ;;  %v4184_v45 = vpop.trf.xlu0 }
 0x247   :  { %v4749_v46 = vsel %vm4199_vm4, %v4730_v43, 0  ;;  %v4204_v47 = vsel %vm4199_vm4, %v4184_v45, 0 }
 0x248   :  { %v10706_v48 = vand.u32 4294901760, %v4749_v46  ;;  %v10708_v49 = vand.u32 4294901760, %v4204_v47  ;;  %v4275_v50 = vand.u32 4294901760, %v4274_v42  ;;  %v4820_v51 = vand.u32 4294901760, %v4819_v40 }
 0x24a   :  { %v4829_v52 = vsub.f32 %v4749_v46, %v10706_v48  ;;  %v4284_v41 = vsub.f32 %v4204_v47, %v10708_v49  ;;  %v4276_v44 = vsub.f32 %v4274_v42, %v4275_v50  ;;  %v4821_v22 = vsub.f32 %v4819_v40, %v4820_v51  ;;  %v5821_v58 = vpop.trf.xlu1  ;;  %v5275_v59 = vpop.trf.xlu0 }
 0x24b   :  { %v5838_v62 = vsel %vm4199_vm4, %v5821_v58, 0  ;;  %v5292_v63 = vsel %vm4199_vm4, %v5275_v59, 0 }
 0x24c   :  { %v4830_v25 = vand.u32 4294901760, %v4829_v52  ;;  %v4285_v29 = vand.u32 4294901760, %v4284_v41  ;;  %v4277_v32 = vand.u32 4294901760, %v4276_v44  ;;  %v4822_v53 = vand.u32 4294901760, %v4821_v22 }
 0x24d   :  { %v10740_v2 = vand.u32 4294901760, %v5838_v62  ;;  %v10742_v3 = vand.u32 4294901760, %v5292_v63 }
 0x24e   :  { %9373 = vmatprep.mubr.f32.mxu0 %v4277_v32  ;;  %9415 = vmatprep.mubr.f32.mxu1 %v4822_v53  ;;  %v4286_v54 = vsub.f32 %v4284_v41, %v4285_v29  ;;  %v4831_v55 = vsub.f32 %v4829_v52, %v4830_v25  ;;  %v5822_v60 = vpop.trf.xlu1  ;;  %v5276_v61 = vpop.trf.xlu0 }
 0x24f   :  { %v5841_v0 = vsel %vm4199_vm4, %v5822_v60, 0  ;;  %v5295_v1 = vsel %vm4199_vm4, %v5276_v61, 0  ;;  %v5911_v10 = vsub.f32 %v5838_v62, %v10740_v2  ;;  %v5365_v11 = vsub.f32 %v5292_v63, %v10742_v3 }
 0x250   :  { %v4287_v56 = vand.u32 4294901760, %v4286_v54  ;;  %v4832_v57 = vand.u32 4294901760, %v4831_v55  ;;  %v10748_v6 = vand.u32 4294901760, %v5841_v0  ;;  %v10750_v9 = vand.u32 4294901760, %v5295_v1 }
 0x251   :  { %v5912_v15 = vand.u32 4294901760, %v5911_v10  ;;  %v5366_v4 = vand.u32 4294901760, %v5365_v11 }
 0x252   :  { %9374 = vmatmul.mubr.f32.vlgmr.msra.gmra.mrb[0].mxu0 %v4287_v56  ;;  %9416 = vmatmul.mubr.f32.vlgmr.msra.gmra.mrb[0].mxu1 %v4832_v57  ;;  %v10761_v12 = vsub.f32 %v5841_v0, %v10748_v6  ;;  %v5375_v14 = vsub.f32 %v5295_v1, %v10750_v9  ;;  %v6913_v31 = vpop.trf.xlu1  ;;  %v6367_v24 = vpop.trf.xlu0 }
 0x253   :  { %9904 = vmatpush3.bf16.msra.mxu0 %v10688_v26  ;;  %9928 = vmatpush3.bf16.msra.mxu1 %v10688_v26  ;;  %v5367_v18 = vsub.f32 %v5365_v11, %v5366_v4  ;;  %v5913_v7 = vsub.f32 %v5911_v10, %v5912_v15  ;;  %v6930_v35 = vsel %vm4199_vm4, %v6913_v31, 0  ;;  %v6384_v36 = vsel %vm4199_vm4, %v6367_v24, 0 }
 0x254   :  { %9380 = vmatprep.mubr.f32.mxu0 %v10700_v39  ;;  %9422 = vmatprep.mubr.f32.mxu1 %v10698_v38  ;;  %v5922_v5 = vand.u32 4294901760, %v10761_v12  ;;  %v5376_v17 = vand.u32 4294901760, %v5375_v14 }
 0x255   :  { %9906 = vmatprep.subr.bf16.mxu0 %v10690_v27  ;;  %9930 = vmatprep.subr.bf16.mxu1 %v10690_v27  ;;  %v5368_v20 = vand.u32 4294901760, %v5367_v18  ;;  %v5914_v21 = vand.u32 4294901760, %v5913_v7 }
 0x256   :  { %v5923_v8 = vsub.f32 %v10761_v12, %v5922_v5  ;;  %v5377_v19 = vsub.f32 %v5375_v14, %v5376_v17  ;;  %v6914_v28 = vpop.trf.xlu1  ;;  %v6368_v34 = vpop.trf.xlu0 }
 0x257   :  { %v6933_v37 = vsel %vm4199_vm4, %v6914_v28, 0 }
 0x258   :  { %v5924_v23 = vand.u32 4294901760, %v5923_v8  ;;  %v5378_v30 = vand.u32 4294901760, %v5377_v19 }
 0x25a   :  { %9381 = vmatmul.mubr.f32.vlgmr.msra.gmra.mrb[0].mxu0 %v10708_v49  ;;  %9423 = vmatmul.mubr.f32.vlgmr.msra.gmra.mrb[0].mxu1 %v10706_v48  ;;  %v8005_v55 = vpop.trf.xlu1  ;;  %v7459_v56 = vpop.trf.xlu0 }
 0x25b   :  { %9908 = vmatpush3.bf16.msra.mxu0 %v10690_v27  ;;  %9932 = vmatpush3.bf16.msra.mxu1 %v10690_v27  ;;  %v8022_v59 = vsel %vm4199_vm4, %v8005_v55, 0  ;;  %v7476_v60 = vsel %vm4199_vm4, %v7459_v56, 0 }
 0x25c   :  { %9387 = vmatprep.mubr.f32.mxu0 %v4274_v42  ;;  %9429 = vmatprep.mubr.f32.mxu1 %v4819_v40  ;;  %v10823_v40 = vand.u32 4294901760, %v6384_v36  ;;  %v10829_v42 = vand.u32 4294901760, %v6933_v37  ;;  %v10902_v63 = vand.u32 4294901760, %v8022_v59  ;;  %v10904_v0 = vand.u32 4294901760, %v7476_v60 }
 0x25d   :  { %9910 = vmatprep.subr.msk.bf16.mxu0 %vm10668_vm3, %v10308_v16  ;;  %9934 = vmatprep.subr.msk.bf16.mxu1 %vm10668_vm3, %v10308_v16 }
 0x25e   :  { %v6457_v46 = vsub.f32 %v6384_v36, %v10823_v40  ;;  %v10842_v47 = vsub.f32 %v6933_v37, %v10829_v42  ;;  %v8006_v57 = vpop.trf.xlu1  ;;  %v7460_v58 = vpop.trf.xlu0 }
 0x25f   :  { %v8025_v61 = vsel %vm4199_vm4, %v8006_v57, 0  ;;  %v7479_v62 = vsel %vm4199_vm4, %v7460_v58, 0 }
 0x260   :  { %v10910_v1 = vand.u32 4294901760, %v8025_v61 }
 0x262   :  { %9388 = vmatmul.mubr.f32.vlgmr.msra.gmra.mrb[0].mxu0 %v4284_v41  ;;  %9430 = vmatmul.mubr.f32.vlgmr.msra.gmra.mrb[0].mxu1 %v4829_v52 }
 0x263   :  { %9912 = vmatpush3.bf16.msk.msra.mxu0 %vm10668_vm3, %v10308_v16  ;;  %9936 = vmatpush3.bf16.msk.msra.mxu1 %vm10668_vm3, %v10308_v16 }
 0x264   :  { %9394 = vmatprep.mubr.f32.mxu0 %v4275_v50  ;;  %9436 = vmatprep.mubr.f32.mxu1 %v4820_v51  ;;  %v6458_v50 = vand.u32 4294901760, %v6457_v46  ;;  %v7014_v51 = vand.u32 4294901760, %v10842_v47 }
 0x265   :  { %9914 = vmatprep.subr.bf16.mxu0 %v10694_v33  ;;  %9938 = vmatprep.subr.bf16.mxu1 %v10694_v33 }
 0x266   :  { %v6459_v41 = vsub.f32 %v6457_v46, %v6458_v50  ;;  %v7015_v22 = vsub.f32 %v10842_v47, %v7014_v51 }
 0x268   :  { %v7016_v53 = vand.u32 4294901760, %v7015_v22 }
 0x26a   :  { %9395 = vmatmul.mubr.f32.vlgmr.msra.gmra.mrb[0].mxu0 %v4285_v29  ;;  %9437 = vmatmul.mubr.f32.vlgmr.msra.gmra.mrb[0].mxu1 %v4830_v25  ;;  %v6460_v29 = vand.u32 4294901760, %v6459_v41 }
 0x26b   :  { %9916 = vmatpush3.bf16.msra.mxu0 %v10694_v33  ;;  %9940 = vmatpush3.bf16.msra.mxu1 %v10694_v33 }
 0x26c   :  { %9401 = vmatprep.mubr.f32.mxu0 %v10700_v39  ;;  %9443 = vmatprep.mubr.f32.mxu1 %v10698_v38 }
 0x26d   :  { %9918 = vmatprep.subr.msk.bf16.mxu0 %vm10668_vm3, %v10308_v16  ;;  %9942 = vmatprep.subr.msk.bf16.mxu1 %vm10668_vm3, %v10308_v16 }
 0x272   :  { %9402 = vmatmul.mubr.f32.vlgmr.msra.gmra.mrb[0].mxu0 %v10708_v49  ;;  %9444 = vmatmul.mubr.f32.vlgmr.msra.gmra.mrb[0].mxu1 %v10706_v48 }
 0x273   :  { %9920 = vmatpush3.bf16.msk.msra.mxu0 %vm10668_vm3, %v10308_v16  ;;  %9944 = vmatpush3.bf16.msk.msra.mxu1 %vm10668_vm3, %v10308_v16 }
 0x274   :  { %9408 = vmatprep.mubr.f32.mxu0 %v10700_v39  ;;  %9450 = vmatprep.mubr.f32.mxu1 %v10698_v38  ;;  %v6387_v38 = vsel %vm4199_vm4, %v6368_v34, 0  ;;  %v10821_v39 = vand.u32 4294901760, %v6930_v35 }
 0x275   :  { %9946 = vmatprep.subr.msk.bf16.mxu0 %vm10668_vm3, %v10308_v16  ;;  %9970 = vmatprep.subr.msk.bf16.mxu1 %vm10668_vm3, %v10308_v16  ;;  %v10831_v43 = vand.u32 4294901760, %v6387_v38 }
 0x276   :  { %v7003_v45 = vsub.f32 %v6930_v35, %v10821_v39 }
 0x27a   :  { %9409 = vmatmul.mubr.f32.vlgmr.msra.gmra.mrb[0].mxu0 %v10708_v49  ;;  %9451 = vmatmul.mubr.f32.vlgmr.msra.gmra.mrb[0].mxu1 %v10706_v48  ;;  %v6467_v48 = vsub.f32 %v6387_v38, %v10831_v43  ;;  %v7004_v49 = vand.u32 4294901760, %v7003_v45 }
 0x27b   :  { %9948 = vmatpush3.bf16.msk.msra.mxu0 %vm10668_vm3, %v10308_v16  ;;  %9972 = vmatpush3.bf16.msk.msra.mxu1 %vm10668_vm3, %v10308_v16 }
 0x27c   :  { %9457 = vmatprep.mubr.f32.mxu0 %v5368_v20  ;;  %9499 = vmatprep.mubr.f32.mxu1 %v5914_v21  ;;  %v6468_v52 = vand.u32 4294901760, %v6467_v48  ;;  %v7005_v44 = vsub.f32 %v7003_v45, %v7004_v49 }
 0x27d   :  { %9950 = vmatprep.subr.bf16.mxu0 %v10688_v26  ;;  %9974 = vmatprep.subr.bf16.mxu1 %v10688_v26 }
 0x27e   :  { %9458 = vmatmul.mubr.f32.vlgmr.msra.gmra.mrb[2].mxu0 %v5378_v30  ;;  %9500 = vmatmul.mubr.f32.vlgmr.msra.gmra.mrb[2].mxu1 %v5924_v23  ;;  %v6469_v25 = vsub.f32 %v6467_v48, %v6468_v52  ;;  %v7006_v32 = vand.u32 4294901760, %v7005_v44 }
 0x27f   :  { %9952 = vmatpush3.bf16.msra.mxu0 %v10688_v26  ;;  %9976 = vmatpush3.bf16.msra.mxu1 %v10688_v26 }
 0x280   :  { %9464 = vmatprep.mubr.f32.mxu0 %v10742_v3  ;;  %9506 = vmatprep.mubr.f32.mxu1 %v10740_v2  ;;  %v6470_v54 = vand.u32 4294901760, %v6469_v25 }
 0x281   :  { %9954 = vmatprep.subr.bf16.mxu0 %v10690_v27  ;;  %9978 = vmatprep.subr.bf16.mxu1 %v10690_v27 }
 0x286   :  { %9465 = vmatmul.mubr.f32.vlgmr.msra.gmra.mrb[2].mxu0 %v10750_v9  ;;  %9507 = vmatmul.mubr.f32.vlgmr.msra.gmra.mrb[2].mxu1 %v10748_v6 }
 0x287   :  { %9956 = vmatpush3.bf16.msra.mxu0 %v10690_v27  ;;  %9980 = vmatpush3.bf16.msra.mxu1 %v10690_v27 }
 0x288   :  { %9471 = vmatprep.mubr.f32.mxu0 %v5365_v11  ;;  %9513 = vmatprep.mubr.f32.mxu1 %v5911_v10 }
 0x289   :  { %9958 = vmatprep.subr.msk.bf16.mxu0 %vm10668_vm3, %v10308_v16  ;;  %9982 = vmatprep.subr.msk.bf16.mxu1 %vm10668_vm3, %v10308_v16 }
 0x28e   :  { %9472 = vmatmul.mubr.f32.vlgmr.msra.gmra.mrb[2].mxu0 %v5375_v14  ;;  %9514 = vmatmul.mubr.f32.vlgmr.msra.gmra.mrb[2].mxu1 %v10761_v12 }
 0x28f   :  { %9960 = vmatpush3.bf16.msk.msra.mxu0 %vm10668_vm3, %v10308_v16  ;;  %9984 = vmatpush3.bf16.msk.msra.mxu1 %vm10668_vm3, %v10308_v16 }
 0x290   :  { %9478 = vmatprep.mubr.f32.mxu0 %v5366_v4  ;;  %9520 = vmatprep.mubr.f32.mxu1 %v5912_v15 }
 0x291   :  { %9962 = vmatprep.subr.bf16.mxu0 %v10694_v33  ;;  %9986 = vmatprep.subr.bf16.mxu1 %v10694_v33 }
 0x296   :  { %9479 = vmatmul.mubr.f32.vlgmr.msra.gmra.mrb[2].mxu0 %v5376_v17  ;;  %9521 = vmatmul.mubr.f32.vlgmr.msra.gmra.mrb[2].mxu1 %v5922_v5 }
 0x297   :  { %9964 = vmatpush3.bf16.msra.mxu0 %v10694_v33  ;;  %9988 = vmatpush3.bf16.msra.mxu1 %v10694_v33 }
 0x298   :  { %9485 = vmatprep.mubr.f32.mxu0 %v10742_v3  ;;  %9527 = vmatprep.mubr.f32.mxu1 %v10740_v2 }
 0x299   :  { %9966 = vmatprep.subr.msk.bf16.mxu0 %vm10668_vm3, %v10308_v16  ;;  %9990 = vmatprep.subr.msk.bf16.mxu1 %vm10668_vm3, %v10308_v16 }
 0x29e   :  { %9486 = vmatmul.mubr.f32.vlgmr.msra.gmra.mrb[2].mxu0 %v10750_v9  ;;  %9528 = vmatmul.mubr.f32.vlgmr.msra.gmra.mrb[2].mxu1 %v10748_v6 }
 0x29f   :  { %9968 = vmatpush3.bf16.msk.msra.mxu0 %vm10668_vm3, %v10308_v16  ;;  %9992 = vmatpush3.bf16.msk.msra.mxu1 %vm10668_vm3, %v10308_v16 }
 0x2a0   :  { %9492 = vmatprep.mubr.f32.mxu0 %v10742_v3  ;;  %9534 = vmatprep.mubr.f32.mxu1 %v10740_v2  ;;  %v10912_v2 = vand.u32 4294901760, %v7479_v62  ;;  %v8095_v3 = vsub.f32 %v8022_v59, %v10902_v63 }
 0x2a1   :  { %9994 = vmatprep.subr.msk.bf16.mxu0 %vm10668_vm3, %v10308_v16  ;;  %10018 = vmatprep.subr.msk.bf16.mxu1 %vm10668_vm3, %v10308_v16 }
 0x2a2   :  { %v7559_v10 = vsub.f32 %v7479_v62, %v10912_v2  ;;  %v8096_v11 = vand.u32 4294901760, %v8095_v3 }
 0x2a4   :  { %v7560_v15 = vand.u32 4294901760, %v7559_v10  ;;  %v8097_v5 = vsub.f32 %v8095_v3, %v8096_v11 }
 0x2a6   :  { %9493 = vmatmul.mubr.f32.vlgmr.msra.gmra.mrb[2].mxu0 %v10750_v9  ;;  %9535 = vmatmul.mubr.f32.vlgmr.msra.gmra.mrb[2].mxu1 %v10748_v6  ;;  %v7549_v6 = vsub.f32 %v7476_v60, %v10904_v0  ;;  %v8105_v9 = vsub.f32 %v8025_v61, %v10910_v1  ;;  %v7561_v18 = vsub.f32 %v7559_v10, %v7560_v15  ;;  %v8098_v8 = vand.u32 4294901760, %v8097_v5 }
 0x2a7   :  { %9996 = vmatpush3.bf16.msk.msra.mxu0 %vm10668_vm3, %v10308_v16  ;;  %10020 = vmatpush3.bf16.msk.msra.mxu1 %vm10668_vm3, %v10308_v16 }
 0x2a8   :  { %9541 = vmatprep.mubr.f32.mxu0 %v6460_v29  ;;  %9583 = vmatprep.mubr.f32.mxu1 %v7006_v32  ;;  %v7550_v12 = vand.u32 4294901760, %v7549_v6  ;;  %v8106_v14 = vand.u32 4294901760, %v8105_v9  ;;  %v7562_v20 = vand.u32 4294901760, %v7561_v18 }
 0x2a9   :  { %9998 = vmatprep.subr.bf16.mxu0 %v10688_v26  ;;  %10022 = vmatprep.subr.bf16.mxu1 %v10688_v26 }
 0x2aa   :  { %9542 = vmatmul.mubr.f32.vlgmr.msra.gmra.mrb[4].mxu0 %v6470_v54  ;;  %9584 = vmatmul.mubr.f32.vlgmr.msra.gmra.mrb[4].mxu1 %v7016_v53  ;;  %v7551_v4 = vsub.f32 %v7549_v6, %v7550_v12  ;;  %v8107_v17 = vsub.f32 %v8105_v9, %v8106_v14 }
 0x2ab   :  { %10000 = vmatpush3.bf16.msra.mxu0 %v10688_v26  ;;  %10024 = vmatpush3.bf16.msra.mxu1 %v10688_v26 }
 0x2ac   :  { %9548 = vmatprep.mubr.f32.mxu0 %v10823_v40  ;;  %9590 = vmatprep.mubr.f32.mxu1 %v10821_v39  ;;  %v7552_v7 = vand.u32 4294901760, %v7551_v4  ;;  %v8108_v19 = vand.u32 4294901760, %v8107_v17 }
 0x2ad   :  { %10002 = vmatprep.subr.bf16.mxu0 %v10690_v27  ;;  %10026 = vmatprep.subr.bf16.mxu1 %v10690_v27 }
 0x2b2   :  { %9549 = vmatmul.mubr.f32.vlgmr.msra.gmra.mrb[4].mxu0 %v10831_v43  ;;  %9591 = vmatmul.mubr.f32.vlgmr.msra.gmra.mrb[4].mxu1 %v10829_v42 }
 0x2b3   :  { %10004 = vmatpush3.bf16.msra.mxu0 %v10690_v27  ;;  %10028 = vmatpush3.bf16.msra.mxu1 %v10690_v27 }
 0x2b4   :  { %9555 = vmatprep.mubr.f32.mxu0 %v6457_v46  ;;  %9597 = vmatprep.mubr.f32.mxu1 %v7003_v45 }
 0x2b5   :  { %10006 = vmatprep.subr.msk.bf16.mxu0 %vm10668_vm3, %v10308_v16  ;;  %10030 = vmatprep.subr.msk.bf16.mxu1 %vm10668_vm3, %v10308_v16 }
 0x2ba   :  { %9556 = vmatmul.mubr.f32.vlgmr.msra.gmra.mrb[4].mxu0 %v6467_v48  ;;  %9598 = vmatmul.mubr.f32.vlgmr.msra.gmra.mrb[4].mxu1 %v10842_v47 }
 0x2bb   :  { %10008 = vmatpush3.bf16.msk.msra.mxu0 %vm10668_vm3, %v10308_v16  ;;  %10032 = vmatpush3.bf16.msk.msra.mxu1 %vm10668_vm3, %v10308_v16 }
 0x2bc   :  { %9562 = vmatprep.mubr.f32.mxu0 %v6458_v50  ;;  %9604 = vmatprep.mubr.f32.mxu1 %v7004_v49 }
 0x2bd   :  { %10010 = vmatprep.subr.bf16.mxu0 %v10694_v33  ;;  %10034 = vmatprep.subr.bf16.mxu1 %v10694_v33 }
 0x2c2   :  { %9563 = vmatmul.mubr.f32.vlgmr.msra.gmra.mrb[4].mxu0 %v6468_v52  ;;  %9605 = vmatmul.mubr.f32.vlgmr.msra.gmra.mrb[4].mxu1 %v7014_v51 }
 0x2c3   :  { %10012 = vmatpush3.bf16.msra.mxu0 %v10694_v33  ;;  %10036 = vmatpush3.bf16.msra.mxu1 %v10694_v33 }
 0x2c4   :  { %9569 = vmatprep.mubr.f32.mxu0 %v10823_v40  ;;  %9611 = vmatprep.mubr.f32.mxu1 %v10821_v39 }
 0x2c5   :  { %10014 = vmatprep.subr.msk.bf16.mxu0 %vm10668_vm3, %v10308_v16  ;;  %10038 = vmatprep.subr.msk.bf16.mxu1 %vm10668_vm3, %v10308_v16 }
 0x2ca   :  { %9570 = vmatmul.mubr.f32.vlgmr.msra.gmra.mrb[4].mxu0 %v10831_v43  ;;  %9612 = vmatmul.mubr.f32.vlgmr.msra.gmra.mrb[4].mxu1 %v10829_v42 }
 0x2cb   :  { %10016 = vmatpush3.bf16.msk.msra.mxu0 %vm10668_vm3, %v10308_v16  ;;  %10040 = vmatpush3.bf16.msk.msra.mxu1 %vm10668_vm3, %v10308_v16 }
 0x2cc   :  { %9576 = vmatprep.mubr.f32.mxu0 %v10823_v40  ;;  %9618 = vmatprep.mubr.f32.mxu1 %v10821_v39 }
 0x2cd   :  { %10042 = vmatprep.subr.msk.bf16.mxu0 %vm10668_vm3, %v10308_v16  ;;  %10066 = vmatprep.subr.msk.bf16.mxu1 %vm10668_vm3, %v10308_v16 }
 0x2d2   :  { %9577 = vmatmul.mubr.f32.vlgmr.msra.gmra.mrb[4].mxu0 %v10831_v43  ;;  %9619 = vmatmul.mubr.f32.vlgmr.msra.gmra.mrb[4].mxu1 %v10829_v42 }
 0x2d3   :  { %10044 = vmatpush3.bf16.msk.msra.mxu0 %vm10668_vm3, %v10308_v16  ;;  %10068 = vmatpush3.bf16.msk.msra.mxu1 %vm10668_vm3, %v10308_v16 }
 0x2d4   :  { %9625 = vmatprep.mubr.f32.mxu0 %v7552_v7  ;;  %9667 = vmatprep.mubr.f32.mxu1 %v8098_v8 }
 0x2d5   :  { %10046 = vmatprep.subr.bf16.mxu0 %v10688_v26  ;;  %10070 = vmatprep.subr.bf16.mxu1 %v10688_v26 }
 0x2d6   :  { %9626 = vmatmul.mubr.f32.vlgmr.msra.gmra.mrb[6].mxu0 %v7562_v20  ;;  %9668 = vmatmul.mubr.f32.vlgmr.msra.gmra.mrb[6].mxu1 %v8108_v19 }
 0x2d7   :  { %10048 = vmatpush3.bf16.msra.mxu0 %v10688_v26  ;;  %10072 = vmatpush3.bf16.msra.mxu1 %v10688_v26 }
 0x2d8   :  { %9632 = vmatprep.mubr.f32.mxu0 %v10904_v0  ;;  %9674 = vmatprep.mubr.f32.mxu1 %v10902_v63 }
 0x2d9   :  { %10050 = vmatprep.subr.bf16.mxu0 %v10690_v27  ;;  %10074 = vmatprep.subr.bf16.mxu1 %v10690_v27 }
 0x2de   :  { %9633 = vmatmul.mubr.f32.vlgmr.msra.gmra.mrb[6].mxu0 %v10912_v2  ;;  %9675 = vmatmul.mubr.f32.vlgmr.msra.gmra.mrb[6].mxu1 %v10910_v1 }
 0x2df   :  { %10052 = vmatpush3.bf16.msra.mxu0 %v10690_v27  ;;  %10076 = vmatpush3.bf16.msra.mxu1 %v10690_v27 }
 0x2e0   :  { %9639 = vmatprep.mubr.f32.mxu0 %v7549_v6  ;;  %9681 = vmatprep.mubr.f32.mxu1 %v8095_v3 }
 0x2e1   :  { %10054 = vmatprep.subr.msk.bf16.mxu0 %vm10668_vm3, %v10308_v16  ;;  %10078 = vmatprep.subr.msk.bf16.mxu1 %vm10668_vm3, %v10308_v16 }
 0x2e6   :  { %9640 = vmatmul.mubr.f32.vlgmr.msra.gmra.mrb[6].mxu0 %v7559_v10  ;;  %9682 = vmatmul.mubr.f32.vlgmr.msra.gmra.mrb[6].mxu1 %v8105_v9 }
 0x2e7   :  { %10056 = vmatpush3.bf16.msk.msra.mxu0 %vm10668_vm3, %v10308_v16  ;;  %10080 = vmatpush3.bf16.msk.msra.mxu1 %vm10668_vm3, %v10308_v16 }
 0x2e8   :  { %9646 = vmatprep.mubr.f32.mxu0 %v7550_v12  ;;  %9688 = vmatprep.mubr.f32.mxu1 %v8096_v11 }
 0x2e9   :  { %10058 = vmatprep.subr.bf16.mxu0 %v10694_v33  ;;  %10082 = vmatprep.subr.bf16.mxu1 %v10694_v33 }
 0x2ee   :  { %9647 = vmatmul.mubr.f32.vlgmr.msra.gmra.mrb[6].mxu0 %v7560_v15  ;;  %9689 = vmatmul.mubr.f32.vlgmr.msra.gmra.mrb[6].mxu1 %v8106_v14 }
 0x2ef   :  { %10060 = vmatpush3.bf16.msra.mxu0 %v10694_v33  ;;  %10084 = vmatpush3.bf16.msra.mxu1 %v10694_v33 }
 0x2f0   :  { %9653 = vmatprep.mubr.f32.mxu0 %v10904_v0  ;;  %9695 = vmatprep.mubr.f32.mxu1 %v10902_v63 }
 0x2f1   :  { %10062 = vmatprep.subr.msk.bf16.mxu0 %vm10668_vm3, %v10308_v16  ;;  %10086 = vmatprep.subr.msk.bf16.mxu1 %vm10668_vm3, %v10308_v16 }
 0x2f6   :  { %9654 = vmatmul.mubr.f32.vlgmr.msra.gmra.mrb[6].mxu0 %v10912_v2  ;;  %9696 = vmatmul.mubr.f32.vlgmr.msra.gmra.mrb[6].mxu1 %v10910_v1 }
 0x2f7   :  { %10064 = vmatpush3.bf16.msk.msra.mxu0 %vm10668_vm3, %v10308_v16  ;;  %10088 = vmatpush3.bf16.msk.msra.mxu1 %vm10668_vm3, %v10308_v16 }
 0x2f8   :  { %9660 = vmatprep.mubr.f32.mxu0 %v10904_v0  ;;  %9702 = vmatprep.mubr.f32.mxu1 %v10902_v63 }
 0x2fe   :  { %9661 = vmatmul.mubr.f32.vlgmr.msra.gmra.mrb[6].mxu0 %v10912_v2  ;;  %9703 = vmatmul.mubr.f32.vlgmr.msra.gmra.mrb[6].mxu1 %v10910_v1 }
 0x34d   :  { %v9410_v26 = vpop.f32.mrb[0].mxu0  ;;  %v9452_v27 = vpop.f32.mrb[0].mxu1 }
 0x34e   :  { %4709 = vst.msk [vmem:[#allocation7 + $0x8] sm:$0xff] %vm4199_vm4, %v9410_v26  ;;  %5255 = vst.msk [vmem:[#allocation7 + $0x18] sm:$0xff] %vm4199_vm4, %v9452_v27  ;;  %v4698_v33 = vpop.f32.mrb[1].mxu0  ;;  %v5243_v21 = vpop.f32.mrb[1].mxu1 }
 0x34f   :  { %4708 = vst.msk [vmem:[#allocation7] sm:$0xff] %vm4199_vm4, %v4698_v33  ;;  %5254 = vst.msk [vmem:[#allocation7 + $0x10] sm:$0xff] %vm4199_vm4, %v5243_v21 }
 0x379   :  { %v9494_v13 = vpop.f32.mrb[2].mxu0  ;;  %v9536_v16 = vpop.f32.mrb[2].mxu1 }
 0x37a   :  { %5801 = vst.msk [vmem:[#allocation7 + $0x28] sm:$0xff] %vm4199_vm4, %v9494_v13  ;;  %6347 = vst.msk [vmem:[#allocation7 + $0x38] sm:$0xff] %vm4199_vm4, %v9536_v16  ;;  %v5789_v23 = vpop.f32.mrb[3].mxu0  ;;  %v6335_v30 = vpop.f32.mrb[3].mxu1 }
 0x37b   :  { %5800 = vst.msk [vmem:[#allocation7 + $0x20] sm:$0xff] %vm4199_vm4, %v5789_v23  ;;  %6346 = vst.msk [vmem:[#allocation7 + $0x30] sm:$0xff] %vm4199_vm4, %v6335_v30 }
 0x3a5   :  { %v9578_v31 = vpop.f32.mrb[4].mxu0  ;;  %v9620_v24 = vpop.f32.mrb[4].mxu1 }
 0x3a6   :  { %6893 = vst.msk [vmem:[#allocation7 + $0x48] sm:$0xff] %vm4199_vm4, %v9578_v31  ;;  %7439 = vst.msk [vmem:[#allocation7 + $0x58] sm:$0xff] %vm4199_vm4, %v9620_v24  ;;  %v6881_v28 = vpop.f32.mrb[5].mxu0  ;;  %v7427_v34 = vpop.f32.mrb[5].mxu1 }
 0x3a7   :  { %6892 = vst.msk [vmem:[#allocation7 + $0x40] sm:$0xff] %vm4199_vm4, %v6881_v28  ;;  %7438 = vst.msk [vmem:[#allocation7 + $0x50] sm:$0xff] %vm4199_vm4, %v7427_v34 }
 0x3d1   :  { %v9662_v35 = vpop.f32.mrb[6].mxu0  ;;  %v9704_v36 = vpop.f32.mrb[6].mxu1 }
 0x3d2   :  { %7985 = vst.msk [vmem:[#allocation7 + $0x68] sm:$0xff] %vm4199_vm4, %v9662_v35  ;;  %8531 = vst.msk [vmem:[#allocation7 + $0x78] sm:$0xff] %vm4199_vm4, %v9704_v36  ;;  %v7973_v37 = vpop.f32.mrb[7].mxu0  ;;  %v8519_v38 = vpop.f32.mrb[7].mxu1 }
 0x3d3   :  { %7984 = vst.msk [vmem:[#allocation7 + $0x60] sm:$0xff] %vm4199_vm4, %v7973_v37  ;;  %8530 = vst.msk [vmem:[#allocation7 + $0x70] sm:$0xff] %vm4199_vm4, %v8519_v38 }
 0x3d4 PF:  { %s10309_s25 = smov [#allocation7]  }
 0x3d5   :  { %s8537_s26 = sshll.u32 %s10309_s25, 4  ;;  %s8538_s26 = int_to_ptr.vmem [resolvable:$true] %s8537_s26 }
 0x3d6   :  { %s10278_s27 = scalar_lea.vmem %s8538_s26, 2048  ;;  %p10283_p11 = scmp.lt.s32.totalorder %s8538_s26, %s8538_s26 }
 0x3d7   :  { %p10279_p10 = scmp.ne.s32.totalorder %s8538_s26, %s10278_s27  ;;  %p10284_p12 = scmp.lt.s32.totalorder %s10278_s27, %s10278_s27 }
 0x3d9   :  { %p10285_p13 = por %p10284_p12, %p10283_p11 }
 0x3db   :  { %p10286_p0 = pnand %p10285_p13, %p10279_p10 }
 0x3dd   :  { %10289 = shalt.err (!%p10286_p0)
}
 0x3de   :  { %s10290_s30 = scalar_lea.hbm %s11029_s2, 2048 }
 0x3df   :  { %p10291_p1 = scmp.ne.s32.totalorder %s11029_s2, %s10290_s30  ;;  %p10294_p2 = scmp.lt.u32.totalorder %s10290_s30, %s11029_s2 }
 0x3e1   :  { %p10296_p3 = pnand %p10294_p2, %p10291_p1 }
 0x3e3   :  { %10299 = shalt.err (!%p10296_p3)
}
 0x3e4   :  { %8543 = dma.vmem_to_hbm [thread:$0]  %s8538_s26, 2048, %s11029_s2, [#allocation6], %s10305_s20, %s10305_s20, %s10306_s21  }
 0x3e5   :  { %10302 = dma.done.wait [#allocation6], 2048  }
 0x3e6   :  { %10303 = vsyncadd [#allocation6], 4294965248 }
 0x3e7   :  { %8547 = vsyncpa [#allocation5], 1 }
 0x3e8   :  { %8548 = vsyncpa [#allocation6], 1 }

</bundles_post_ra>
